<compile_context>
chip_gen: v5e
topology: v5e:2x2
jax: 0.10.0
libtpu: 0.0.40
codegen_flags: <defaults>
</compile_context>

<pallas_src>
from functools import partial

import numpy as np
import jax
import jax.numpy as jnp
from jax.experimental import pallas as pl
from jax.experimental.pallas import tpu as pltpu


# ----------------------------------------------------------------------------
# Pallas kernel: one resolution, grid = (signal, frame_tile)
# ----------------------------------------------------------------------------
def _stft_loss_kernel(fx_ref, fy_ref, basis_ref, num_ref, den_ref, l1_ref, acc_ref,
                      *, nb_pad, eps):
    # fx_ref / fy_ref : (1, tile_f, fft)  raw (un-windowed) frames for this tile
    # basis_ref       : (fft, 2*nb_pad)   [win*cos | -win*sin], lane padded, resident
    # num/den/l1_ref  : (1, 8, 128)       per-signal outputs (scalar broadcast)
    # acc_ref         : SMEM (3,) f32     [sc_num, sc_den, l1_sum] accumulators
    t = pl.program_id(1)

    @pl.when(t == 0)
    def _init():
        acc_ref[0] = jnp.float32(0.0)
        acc_ref[1] = jnp.float32(0.0)
        acc_ref[2] = jnp.float32(0.0)

    basis = basis_ref[...]            # loaded once, reused for both x and y matmuls
    fx = fx_ref[0]                    # (tile_f, fft)
    fy = fy_ref[0]

    # Windowed rDFT as a single lane-dense MXU matmul: [re | im] in one result.
    sx = jnp.dot(fx, basis, preferred_element_type=jnp.float32)   # (tile_f, 2*nb_pad)
    sy = jnp.dot(fy, basis, preferred_element_type=jnp.float32)

    px = sx[:, :nb_pad] * sx[:, :nb_pad] + sx[:, nb_pad:] * sx[:, nb_pad:]   # |X|^2
    py = sy[:, :nb_pad] * sy[:, :nb_pad] + sy[:, nb_pad:] * sy[:, nb_pad:]   # |Y|^2

    # Spectral convergence partial sums (sqrt only feeds this branch).
    d = jnp.sqrt(py) - jnp.sqrt(px)
    num_p = jnp.sum(d * d)
    den_p = jnp.sum(py)

    # log-magnitude L1 via power spectra (padded bins/frames give exactly 0).
    eps2 = jnp.float32(eps * eps)
    l1_p = 0.5 * jnp.sum(jnp.abs(jnp.log(jnp.maximum(px, eps2)) -
                                 jnp.log(jnp.maximum(py, eps2))))

    acc_ref[0] = acc_ref[0] + num_p
    acc_ref[1] = acc_ref[1] + den_p
    acc_ref[2] = acc_ref[2] + l1_p

    @pl.when(t == pl.num_programs(1) - 1)
    def _finalize():
        num_ref[...] = jnp.zeros(num_ref.shape, jnp.float32) + acc_ref[0]
        den_ref[...] = jnp.zeros(den_ref.shape, jnp.float32) + acc_ref[1]
        l1_ref[...] = jnp.zeros(l1_ref.shape, jnp.float32) + acc_ref[2]


# ----------------------------------------------------------------------------
# Host-side helpers (framing, fused window+DFT basis, tile sizing)
# ----------------------------------------------------------------------------
def _round_up(n, m):
    return (n + m - 1) // m * m


def _pick_tile_f(n_frames, fft_size):
    # Largest frame tile (multiple of 8, <=256 rows) keeping one (tile_f, fft) f32
    # tile around <=512 KiB so 2 signals x 2 pipeline buffers stay far inside VMEM
    # on v5e/v6e (128 MiB) and v7x (64 MiB).
    cap = max(8, min(256, ((512 * 1024) // (fft_size * 4)) // 8 * 8))
    n_tiles = max(1, -(-n_frames // cap))
    return _round_up(-(-n_frames // n_tiles), 8)


def _windowed_dft_basis(fft_size, win_length, nb_pad):
    # Fused [win*cos | -win*sin] basis, bins zero-padded to nb_pad (multiple of 128)
    # so the MXU N dim and all downstream elementwise vregs are lane dense.
    n_bins = fft_size // 2 + 1
    n = np.arange(win_length)
    win = 0.5 - 0.5 * np.cos(2.0 * np.pi * n / win_length)        # periodic hann
    wfull = np.zeros(fft_size)
    lpad = (fft_size - win_length) // 2
    wfull[lpad:lpad + win_length] = win
    nn = np.arange(fft_size)[:, None].astype(np.float64)
    kk = np.arange(n_bins)[None, :].astype(np.float64)
    ang = 2.0 * np.pi * nn * kk / fft_size
    basis = np.zeros((fft_size, 2 * nb_pad), dtype=np.float32)
    basis[:, :n_bins] = (wfull[:, None] * np.cos(ang)).astype(np.float32)
    basis[:, nb_pad:nb_pad + n_bins] = (-wfull[:, None] * np.sin(ang)).astype(np.float32)
    return jnp.asarray(basis)


def _frames(x, fft_size, hop_size, n_frames, n_frames_pad):
    # torch.stft(center=True, pad_mode='reflect') framing WITHOUT the window
    # (window is folded into the DFT basis).  Zero-padded frames contribute 0.
    # TODO(synk): build frames in-kernel from the reflect-padded signal (pl.ds
    # strided reads) to remove the ~fft/hop x HBM expansion of this materialization.
    pad = fft_size // 2
    xp = jnp.pad(x, ((0, 0), (pad, pad)), mode="reflect")
    idx = np.arange(n_frames)[:, None] * hop_size + np.arange(fft_size)[None, :]
    fr = xp[:, idx]                                     # (NB, n_frames, fft)
    if n_frames_pad > n_frames:
        fr = jnp.pad(fr, ((0, 0), (0, n_frames_pad - n_frames), (0, 0)))
    return fr


def stft_loss_terms(x, y, fft_size, hop_size, win_length, eps=1e-8):
    """x, y: (NB, T).  Returns per-signal (sc, l1_sum) plus true (n_frames, n_bins)."""
    NB, T = x.shape
    n_bins = fft_size // 2 + 1
    nb_pad = _round_up(n_bins, 128)
    pad = fft_size // 2
    n_frames = 1 + (T + 2 * pad - fft_size) // hop_size
    tile_f = _pick_tile_f(n_frames, fft_size)
    n_frames_pad = _round_up(n_frames, tile_f)
    n_tiles = n_frames_pad // tile_f

    fx = _frames(x, fft_size, hop_size, n_frames, n_frames_pad)
    fy = _frames(y, fft_size, hop_size, n_frames, n_frames_pad)
    basis = _windowed_dft_basis(fft_size, win_length, nb_pad)

    # Explicit VMEM budget (frames double-buffered x 2 signals, resident basis, temps),
    # capped at 64 MiB so the same tiling also fits v7x's smaller VMEM.
    est = (2 * int(basis.size) * 4 + 6 * tile_f * fft_size * 4
           + 16 * tile_f * nb_pad * 4 + (2 << 20))
    vmem_limit = int(min(max(est, 32 * 1024 * 1024), 64 * 1024 * 1024))

    out_shape = jax.ShapeDtypeStruct((NB, 8, 128), jnp.float32)
    out_spec = pl.BlockSpec((1, 8, 128), lambda b, t: (b, 0, 0))

    num, den, l1 = pl.pallas_call(
        partial(_stft_loss_kernel, nb_pad=nb_pad, eps=float(eps)),
        out_shape=(out_shape, out_shape, out_shape),
        grid=(NB, n_tiles),
        in_specs=[
            pl.BlockSpec((1, tile_f, fft_size), lambda b, t: (b, t, 0)),
            pl.BlockSpec((1, tile_f, fft_size), lambda b, t: (b, t, 0)),
            pl.BlockSpec((fft_size, 2 * nb_pad), lambda b, t: (0, 0)),
        ],
        out_specs=(out_spec, out_spec, out_spec),
        scratch_shapes=[pltpu.SMEM((3,), jnp.float32)],
        compiler_params=pltpu.CompilerParams(
            dimension_semantics=("parallel", "arbitrary"),
            vmem_limit_bytes=vmem_limit),
    )(fx, fy, basis)

    # Per-signal spectral convergence (matches auraloss: no eps guard on the denom).
    sc = jnp.sqrt(num[:, 0, 0]) / jnp.sqrt(den[:, 0, 0])
    return sc, l1[:, 0, 0], n_frames, n_bins


# ----------------------------------------------------------------------------
# SumAndDifferenceSTFTLoss forward
# ----------------------------------------------------------------------------
def sum_and_difference_stft_loss(inp, tgt, fft_sizes, hop_sizes, win_lengths,
                                 w_sum=1.0, w_diff=1.0, eps=1e-8):
    """inp, tgt: (B, 2, T) stereo audio.  Returns the aggregate scalar loss."""
    assert inp.shape == tgt.shape and inp.shape[1] == 2
    B = inp.shape[0]

    # Mid/side signals; concatenate (sum, diff) along batch so each resolution is a
    # single fused pallas_call over 2*B signals.
    x = jnp.concatenate([inp[:, 0] + inp[:, 1], inp[:, 0] - inp[:, 1]], axis=0)
    y = jnp.concatenate([tgt[:, 0] + tgt[:, 1], tgt[:, 0] - tgt[:, 1]], axis=0)

    sum_total = jnp.float32(0.0)
    diff_total = jnp.float32(0.0)
    for fs, hs, wl in zip(fft_sizes, hop_sizes, win_lengths):
        sc, l1, n_frames, n_bins = stft_loss_terms(x, y, fs, hs, wl, eps)
        denom = float(B * n_frames * n_bins)            # true elements (padding excluded)
        sum_total = sum_total + jnp.mean(sc[:B]) + jnp.sum(l1[:B]) / denom
        diff_total = diff_total + jnp.mean(sc[B:]) + jnp.sum(l1[B:]) / denom

    r = float(len(fft_sizes))
    sum_loss = sum_total / r                            # global_reduction='mean'
    diff_loss = diff_total / r
    return (w_sum * sum_loss + w_diff * diff_loss) / 2.0


# ----------------------------------------------------------------------------
# Pure-JAX reference (jnp.fft) for the correctness check
# ----------------------------------------------------------------------------
def _ref_loss(inp, tgt, fft_sizes, hop_sizes, win_lengths, eps=1e-8):
    def stft_mag(x, fft, hop, wl):
        pad = fft // 2
        xp = jnp.pad(x, ((0, 0), (pad, pad)), mode="reflect")
        n_frames = 1 + (x.shape[1] + 2 * pad - fft) // hop
        idx = np.arange(n_frames)[:, None] * hop + np.arange(fft)[None, :]
        n = np.arange(wl)
        win = 0.5 - 0.5 * np.cos(2.0 * np.pi * n / wl)
        wfull = np.zeros(fft)
        lp = (fft - wl) // 2
        wfull[lp:lp + wl] = win
        frames = xp[:, idx] * jnp.asarray(wfull.astype(np.float32))
        return jnp.abs(jnp.fft.rfft(frames, axis=-1)).astype(jnp.float32)

    def stft_loss(x, y, fft, hop, wl):
        xm = stft_mag(x, fft, hop, wl)
        ym = stft_mag(y, fft, hop, wl)
        d = ym - xm
        sc = jnp.sqrt(jnp.sum(d * d, axis=(1, 2))) / jnp.sqrt(jnp.sum(ym * ym, axis=(1, 2)))
        l1 = jnp.mean(jnp.abs(jnp.log(jnp.maximum(xm, eps)) -
                              jnp.log(jnp.maximum(ym, eps))))
        return jnp.mean(sc) + l1

    def mr(x, y):
        return sum(stft_loss(x, y, f, h, w)
                   for f, h, w in zip(fft_sizes, hop_sizes, win_lengths)) / len(fft_sizes)

    x_sum, x_diff = inp[:, 0] + inp[:, 1], inp[:, 0] - inp[:, 1]
    y_sum, y_diff = tgt[:, 0] + tgt[:, 1], tgt[:, 0] - tgt[:, 1]
    return (mr(x_sum, y_sum) + mr(x_diff, y_diff)) / 2.0


if __name__ == "__main__":
    key = jax.random.PRNGKey(0)
    k1, k2 = jax.random.split(key)

    B, CH, T = 2, 2, 4096  # stereo audio (batch, 2, seq_len)
    inp = jax.random.normal(k1, (B, CH, T), dtype=jnp.float32)
    tgt = jax.random.normal(k2, (B, CH, T), dtype=jnp.float32)

    # Small multi-resolution configuration (module takes these as ctor args).
    fft_sizes = [64, 128, 32]
    hop_sizes = [16, 32, 8]
    win_lengths = [64, 128, 32]

    loss = sum_and_difference_stft_loss(inp, tgt, fft_sizes, hop_sizes, win_lengths)
    loss = jax.block_until_ready(loss)

    ref = jax.block_until_ready(_ref_loss(inp, tgt, fft_sizes, hop_sizes, win_lengths))
    np.testing.assert_allclose(np.asarray(loss), np.asarray(ref), rtol=5e-3, atol=5e-3)

    print("KERNEL_OK")
</pallas_src>

<mosaic_0001>
module attributes {stable_mosaic.version = 11 : i64} {
  func.func @_stft_loss_kernel(%arg0: i32, %arg1: i32, %arg2: memref<1x136x64xf32, #tpu.memory_space<vmem>>, %arg3: memref<1x136x64xf32, #tpu.memory_space<vmem>>, %arg4: memref<64x256xf32, #tpu.memory_space<vmem>>, %arg5: memref<1x8x128xf32, #tpu.memory_space<vmem>>, %arg6: memref<1x8x128xf32, #tpu.memory_space<vmem>>, %arg7: memref<1x8x128xf32, #tpu.memory_space<vmem>>, %arg8: memref<3xf32, #tpu.memory_space<smem>>) attributes {dimension_semantics = [#tpu.dimension_semantics<parallel>, #tpu.dimension_semantics<arbitrary>], iteration_bounds = array<i64: 4, 2>, scalar_prefetch = 0 : i64, scratch_operands = 1 : i64, tpu.core_type = #tpu.core_type<tc>, window_params = [{transform_indices = @transform_0, window_bounds = array<i64: 1, 136, 64>}, {transform_indices = @transform_1, window_bounds = array<i64: 1, 136, 64>}, {pipeline_mode = #tpu.pipeline_mode<synchronous>, transform_indices = @transform_2, window_bounds = array<i64: 64, 256>}, {transform_indices = @transform_3, window_bounds = array<i64: 1, 8, 128>}, {transform_indices = @transform_4, window_bounds = array<i64: 1, 8, 128>}, {transform_indices = @transform_5, window_bounds = array<i64: 1, 8, 128>}]} {
    %c0_i32 = arith.constant 0 : i32
    %0 = arith.cmpi eq, %arg1, %c0_i32 : i32
    %1 = arith.extui %0 : i1 to i32
    %c0_i32_0 = arith.constant 0 : i32
    %2 = arith.cmpi ne, %1, %c0_i32_0 : i32
    scf.if %2 {
      %cst_20 = arith.constant 0.000000e+00 : f32
      %c0_21 = arith.constant 0 : index
      %61 = memref.load %arg8[%c0_21] : memref<3xf32, #tpu.memory_space<smem>>
      memref.store %cst_20, %arg8[%c0_21] : memref<3xf32, #tpu.memory_space<smem>>
      %cst_22 = arith.constant 0.000000e+00 : f32
      %c1_23 = arith.constant 1 : index
      %62 = memref.load %arg8[%c1_23] : memref<3xf32, #tpu.memory_space<smem>>
      memref.store %cst_22, %arg8[%c1_23] : memref<3xf32, #tpu.memory_space<smem>>
      %cst_24 = arith.constant 0.000000e+00 : f32
      %c2_25 = arith.constant 2 : index
      %63 = memref.load %arg8[%c2_25] : memref<3xf32, #tpu.memory_space<smem>>
      memref.store %cst_24, %arg8[%c2_25] : memref<3xf32, #tpu.memory_space<smem>>
    } else {
    }
    %c0 = arith.constant 0 : index
    %c0_1 = arith.constant 0 : index
    %3 = vector.load %arg4[%c0, %c0_1] : memref<64x256xf32, #tpu.memory_space<vmem>>, vector<64x256xf32>
    %c0_2 = arith.constant 0 : index
    %c0_3 = arith.constant 0 : index
    %c0_4 = arith.constant 0 : index
    %4 = vector.load %arg2[%c0_2, %c0_3, %c0_4] : memref<1x136x64xf32, #tpu.memory_space<vmem>>, vector<1x136x64xf32>
    %5 = vector.shape_cast %4 : vector<1x136x64xf32> to vector<136x64xf32>
    %c0_5 = arith.constant 0 : index
    %c0_6 = arith.constant 0 : index
    %c0_7 = arith.constant 0 : index
    %6 = vector.load %arg3[%c0_5, %c0_6, %c0_7] : memref<1x136x64xf32, #tpu.memory_space<vmem>>, vector<1x136x64xf32>
    %7 = vector.shape_cast %6 : vector<1x136x64xf32> to vector<136x64xf32>
    %cst = arith.constant dense<0.000000e+00> : vector<136x256xf32>
    %8 = tpu.matmul %5, %3, %cst {dimension_numbers = #tpu.dot_dimension_numbers<[1], [0], [0], [1], [0, 0, 1, 1], [], []>} : vector<136x64xf32>, vector<64x256xf32>, vector<136x256xf32> -> vector<136x256xf32>
    %cst_8 = arith.constant dense<0.000000e+00> : vector<136x256xf32>
    %9 = tpu.matmul %7, %3, %cst_8 {dimension_numbers = #tpu.dot_dimension_numbers<[1], [0], [0], [1], [0, 0, 1, 1], [], []>} : vector<136x64xf32>, vector<64x256xf32>, vector<136x256xf32> -> vector<136x256xf32>
    %10 = vector.extract_strided_slice %8 {offsets = [0, 0], sizes = [136, 128], strides = [1, 1]} : vector<136x256xf32> to vector<136x128xf32>
    %11 = vector.extract_strided_slice %8 {offsets = [0, 0], sizes = [136, 128], strides = [1, 1]} : vector<136x256xf32> to vector<136x128xf32>
    %12 = arith.mulf %10, %11 : vector<136x128xf32>
    %13 = vector.extract_strided_slice %8 {offsets = [0, 128], sizes = [136, 128], strides = [1, 1]} : vector<136x256xf32> to vector<136x128xf32>
    %14 = vector.extract_strided_slice %8 {offsets = [0, 128], sizes = [136, 128], strides = [1, 1]} : vector<136x256xf32> to vector<136x128xf32>
    %15 = arith.mulf %13, %14 : vector<136x128xf32>
    %16 = arith.addf %12, %15 : vector<136x128xf32>
    %17 = vector.extract_strided_slice %9 {offsets = [0, 0], sizes = [136, 128], strides = [1, 1]} : vector<136x256xf32> to vector<136x128xf32>
    %18 = vector.extract_strided_slice %9 {offsets = [0, 0], sizes = [136, 128], strides = [1, 1]} : vector<136x256xf32> to vector<136x128xf32>
    %19 = arith.mulf %17, %18 : vector<136x128xf32>
    %20 = vector.extract_strided_slice %9 {offsets = [0, 128], sizes = [136, 128], strides = [1, 1]} : vector<136x256xf32> to vector<136x128xf32>
    %21 = vector.extract_strided_slice %9 {offsets = [0, 128], sizes = [136, 128], strides = [1, 1]} : vector<136x256xf32> to vector<136x128xf32>
    %22 = arith.mulf %20, %21 : vector<136x128xf32>
    %23 = arith.addf %19, %22 : vector<136x128xf32>
    %24 = math.sqrt %23 : vector<136x128xf32>
    %25 = math.sqrt %16 : vector<136x128xf32>
    %26 = arith.subf %24, %25 : vector<136x128xf32>
    %27 = arith.mulf %26, %26 : vector<136x128xf32>
    %28 = vector.shape_cast %27 : vector<136x128xf32> to vector<1x136x128xf32>
    %cst_9 = arith.constant dense<0.000000e+00> : vector<1xf32>
    %29 = vector.multi_reduction <add>, %28, %cst_9 [1, 2] : vector<1x136x128xf32> to vector<1xf32>
    %30 = vector.shape_cast %29 : vector<1xf32> to vector<1x1x1xf32>
    %31 = vector.extract %30[0, 0, 0] : f32 from vector<1x1x1xf32>
    %32 = vector.shape_cast %23 : vector<136x128xf32> to vector<1x136x128xf32>
    %cst_10 = arith.constant dense<0.000000e+00> : vector<1xf32>
    %33 = vector.multi_reduction <add>, %32, %cst_10 [1, 2] : vector<1x136x128xf32> to vector<1xf32>
    %34 = vector.shape_cast %33 : vector<1xf32> to vector<1x1x1xf32>
    %35 = vector.extract %34[0, 0, 0] : f32 from vector<1x1x1xf32>
    %cst_11 = arith.constant 1.000000e-16 : f32
    %36 = vector.broadcast %cst_11 : f32 to vector<136x128xf32>
    %37 = arith.maximumf %16, %36 : vector<136x128xf32>
    %38 = math.log %37 : vector<136x128xf32>
    %cst_12 = arith.constant 1.000000e-16 : f32
    %39 = vector.broadcast %cst_12 : f32 to vector<136x128xf32>
    %40 = arith.maximumf %23, %39 : vector<136x128xf32>
    %41 = math.log %40 : vector<136x128xf32>
    %42 = arith.subf %38, %41 : vector<136x128xf32>
    %43 = math.absf %42 : vector<136x128xf32>
    %44 = vector.shape_cast %43 : vector<136x128xf32> to vector<1x136x128xf32>
    %cst_13 = arith.constant dense<0.000000e+00> : vector<1xf32>
    %45 = vector.multi_reduction <add>, %44, %cst_13 [1, 2] : vector<1x136x128xf32> to vector<1xf32>
    %46 = vector.shape_cast %45 : vector<1xf32> to vector<1x1x1xf32>
    %47 = vector.extract %46[0, 0, 0] : f32 from vector<1x1x1xf32>
    %cst_14 = arith.constant 5.000000e-01 : f32
    %48 = arith.mulf %cst_14, %47 : f32
    %c0_15 = arith.constant 0 : index
    %49 = memref.load %arg8[%c0_15] : memref<3xf32, #tpu.memory_space<smem>>
    %50 = arith.addf %49, %31 : f32
    %c0_16 = arith.constant 0 : index
    %51 = memref.load %arg8[%c0_16] : memref<3xf32, #tpu.memory_space<smem>>
    memref.store %50, %arg8[%c0_16] : memref<3xf32, #tpu.memory_space<smem>>
    %c1 = arith.constant 1 : index
    %52 = memref.load %arg8[%c1] : memref<3xf32, #tpu.memory_space<smem>>
    %53 = arith.addf %52, %35 : f32
    %c1_17 = arith.constant 1 : index
    %54 = memref.load %arg8[%c1_17] : memref<3xf32, #tpu.memory_space<smem>>
    memref.store %53, %arg8[%c1_17] : memref<3xf32, #tpu.memory_space<smem>>
    %c2 = arith.constant 2 : index
    %55 = memref.load %arg8[%c2] : memref<3xf32, #tpu.memory_space<smem>>
    %56 = arith.addf %55, %48 : f32
    %c2_18 = arith.constant 2 : index
    %57 = memref.load %arg8[%c2_18] : memref<3xf32, #tpu.memory_space<smem>>
    memref.store %56, %arg8[%c2_18] : memref<3xf32, #tpu.memory_space<smem>>
    %c1_i32 = arith.constant 1 : i32
    %58 = arith.cmpi eq, %arg1, %c1_i32 : i32
    %59 = arith.extui %58 : i1 to i32
    %c0_i32_19 = arith.constant 0 : i32
    %60 = arith.cmpi ne, %59, %c0_i32_19 : i32
    scf.if %60 {
      %cst_20 = arith.constant 0.000000e+00 : f32
      %61 = vector.broadcast %cst_20 : f32 to vector<1x8x128xf32>
      %c0_21 = arith.constant 0 : index
      %62 = memref.load %arg8[%c0_21] : memref<3xf32, #tpu.memory_space<smem>>
      %63 = vector.broadcast %62 : f32 to vector<1x8x128xf32>
      %64 = arith.addf %61, %63 : vector<1x8x128xf32>
      %c0_22 = arith.constant 0 : index
      %c0_23 = arith.constant 0 : index
      %c0_24 = arith.constant 0 : index
      %65 = vector.load %arg5[%c0_22, %c0_23, %c0_24] : memref<1x8x128xf32, #tpu.memory_space<vmem>>, vector<1x8x128xf32>
      tpu.vector_store %arg5[%c0_22, %c0_23, %c0_24], %64 {strides = array<i32>} : memref<1x8x128xf32, #tpu.memory_space<vmem>>, vector<1x8x128xf32>,
      %cst_25 = arith.constant 0.000000e+00 : f32
      %66 = vector.broadcast %cst_25 : f32 to vector<1x8x128xf32>
      %c1_26 = arith.constant 1 : index
      %67 = memref.load %arg8[%c1_26] : memref<3xf32, #tpu.memory_space<smem>>
      %68 = vector.broadcast %67 : f32 to vector<1x8x128xf32>
      %69 = arith.addf %66, %68 : vector<1x8x128xf32>
      %c0_27 = arith.constant 0 : index
      %c0_28 = arith.constant 0 : index
      %c0_29 = arith.constant 0 : index
      %70 = vector.load %arg6[%c0_27, %c0_28, %c0_29] : memref<1x8x128xf32, #tpu.memory_space<vmem>>, vector<1x8x128xf32>
      tpu.vector_store %arg6[%c0_27, %c0_28, %c0_29], %69 {strides = array<i32>} : memref<1x8x128xf32, #tpu.memory_space<vmem>>, vector<1x8x128xf32>,
      %cst_30 = arith.constant 0.000000e+00 : f32
      %71 = vector.broadcast %cst_30 : f32 to vector<1x8x128xf32>
      %c2_31 = arith.constant 2 : index
      %72 = memref.load %arg8[%c2_31] : memref<3xf32, #tpu.memory_space<smem>>
      %73 = vector.broadcast %72 : f32 to vector<1x8x128xf32>
      %74 = arith.addf %71, %73 : vector<1x8x128xf32>
      %c0_32 = arith.constant 0 : index
      %c0_33 = arith.constant 0 : index
      %c0_34 = arith.constant 0 : index
      %75 = vector.load %arg7[%c0_32, %c0_33, %c0_34] : memref<1x8x128xf32, #tpu.memory_space<vmem>>, vector<1x8x128xf32>
      tpu.vector_store %arg7[%c0_32, %c0_33, %c0_34], %74 {strides = array<i32>} : memref<1x8x128xf32, #tpu.memory_space<vmem>>, vector<1x8x128xf32>,
    } else {
    }
    return
  }
  func.func @transform_0(%arg0: i32, %arg1: i32) -> (i32, i32, i32) {
    %c0_i32 = arith.constant 0 : i32
    %c0_i32_0 = arith.constant 0 : i32
    return %arg0, %arg1, %c0_i32 : i32, i32, i32
  }
  func.func @transform_1(%arg0: i32, %arg1: i32) -> (i32, i32, i32) {
    %c0_i32 = arith.constant 0 : i32
    %c0_i32_0 = arith.constant 0 : i32
    return %arg0, %arg1, %c0_i32 : i32, i32, i32
  }
  func.func @transform_2(%arg0: i32, %arg1: i32) -> (i32, i32) {
    %c0_i32 = arith.constant 0 : i32
    %c0_i32_0 = arith.constant 0 : i32
    %c0_i32_1 = arith.constant 0 : i32
    return %c0_i32, %c0_i32_0 : i32, i32
  }
  func.func @transform_3(%arg0: i32, %arg1: i32) -> (i32, i32, i32) {
    %c0_i32 = arith.constant 0 : i32
    %c0_i32_0 = arith.constant 0 : i32
    %c0_i32_1 = arith.constant 0 : i32
    return %arg0, %c0_i32, %c0_i32_0 : i32, i32, i32
  }
  func.func @transform_4(%arg0: i32, %arg1: i32) -> (i32, i32, i32) {
    %c0_i32 = arith.constant 0 : i32
    %c0_i32_0 = arith.constant 0 : i32
    %c0_i32_1 = arith.constant 0 : i32
    return %arg0, %c0_i32, %c0_i32_0 : i32, i32, i32
  }
  func.func @transform_5(%arg0: i32, %arg1: i32) -> (i32, i32, i32) {
    %c0_i32 = arith.constant 0 : i32
    %c0_i32_0 = arith.constant 0 : i32
    %c0_i32_1 = arith.constant 0 : i32
    return %arg0, %c0_i32, %c0_i32_0 : i32, i32, i32
  }
}

</mosaic_0001>

<bundles_post_ra>
// kernel: tpu_custom_call.1
= control target key start
LH: loop header
LB: loop body
LE: loop exit
PB: predicated region body
PF: predicated region fallthrough
CT: control target
= control target key end

     0   :  { %s3427_s0 = inlined_call_operand.vmem [shape: f32[4,272,64], index: 0, kind: input, shape index: {}]   ;;  %s3428_s1 = inlined_call_operand.vmem [shape: f32[4,272,64], index: 1, kind: input, shape index: {}]   ;;  %s3429_s2 = inlined_call_operand.vmem [shape: f32[64,256], index: 2, kind: input, shape index: {}]   ;;  %s3430_s3 = inlined_call_operand.hbm [shape: f32[4,8,128], index: 3, kind: output, shape index: {0}]   ;;  %s3431_s4 = inlined_call_operand.hbm [shape: f32[4,8,128], index: 4, kind: output, shape index: {1}]   ;;  %s3432_s5 = inlined_call_operand.hbm [shape: f32[4,8,128], index: 5, kind: output, shape index: {2}]  }
   0x1   :  { %3452 = sst [smem:[#allocation37_spill]] %s3427_s0 }
   0x2   :  { %3453 = sst [smem:[#allocation38_spill]] %s3428_s1 }
   0x3   :  { %3454 = sst [smem:[#allocation39_spill]] %s3429_s2 }
   0x4   :  { %11 = vsyncpa [#allocation4], 0 }
   0x5   :  { %13 = vsyncpa [#allocation4 + $0x1], 0 }
   0x6   :  { %14 = vsyncpa [#allocation6], 0 }
   0x7   :  { %16 = vsyncpa [#allocation6 + $0x1], 0  ;;  %s2244_s18 = smov 0   ;;  %s2246_s19 = smov 0  }
   0x8   :  { %s2248_s20 = smov 0   ;;  %s2250_s21 = smov 0  }
   0x9   :  { %s2252_s22 = smov 0   ;;  %s2254_s23 = smov 0  }
   0xa   :  { %s2256_s24 = smov 0   ;;  %s2258_s25 = smov 0  }
   0xb LB: > { %s3435_s26 = sadd.s32 4294967295, %s2211_s25   ;;  %s3433_s27 = sadd.s32 4294967294, %s2211_s25   ;;  %s2211_s25 = sphi %s2258_s25, %s22_s25   ;;  %s2207_s24 = sphi %s2256_s24, %s3533_s24   ;;  %s2203_s23 = sphi %s2254_s23, %s3532_s23   ;;  %s2199_s22 = sphi %s2252_s22, %s3531_s22   ;;  %s2195_s21 = sphi %s2250_s21, %s3530_s21   ;;  %s2191_s20 = sphi %s2248_s20, %s3529_s20   ;;  %s2187_s19 = sphi %s2246_s19, %s3528_s19   ;;  %s2183_s18 = sphi %s2244_s18, %s3527_s18  }
   0xc   : > { %s31_s28 = sadd.s32 1, %s2203_s23  ;;  %s34_s29 = sadd.s32 1, %s2207_s24 }
   0xd   : > { %p32_p0 = scmp.ge.s32.totalorder %s31_s28, 2  ;;  %p128_p1 = scmp.ne.s32.totalorder %s2191_s20, %s2187_s19 }
   0xe   : > { %p129_p2 = scmp.eq.s32.totalorder %s3435_s26, 7  ;;  %p134_p4 = scmp.ne.s32.totalorder %s2187_s19, %s2183_s18 }
   0xf   : > { %s3535_s28 = smov (%p32_p0, %s31_s28), 0  ;;  %s3537_s29 = smov (!%p32_p0, %s34_s29), %s2207_s24 }
  0x10   : > { %p2295_p3 = por %p129_p2, %p128_p1  ;;  %p36_p5 = scmp.ge.s32.totalorder %s3537_s29, 4 }
  0x11   : > { %p135_p6 = scmp.eq.s32.totalorder %s3433_s27, 7  ;;  %p1739_p7 = scmp.ge.s32.totalorder %s2211_s25, 1 }
  0x12   : > { %p234_p8 = scmp.lt.s32.totalorder %s2211_s25, 9  ;;  %s3539_s29 = smov (%p36_p5, %s3537_s29), 0 }
  0x13   : > { %3456 = sst [smem:[#allocation10_spill]] %s3539_s29  ;;  %p2307_p9 = por %p135_p6, %p134_p4 }
  0x14   : > { %p235_p10 = pnand %p1739_p7, %p234_p8  ;;  %s115_s7 = ssub.s32 %s2207_s24, %s3539_s29 }
  0x15   : > { %s118_s8 = sadd.s32 1, %s2191_s20  ;;  %p116_p11 = scmp.eq.s32.totalorder %s115_s7, 0 }
  0x16   : > { %238 = sbr.rel (%p235_p10) target bundleno = 629 (0x275), region = 32 }
  0x17   : > { %s2315_s9 = scalar_select %p116_p11, %s2191_s20, %s118_s8  }
  0x1b   : > { %s3434_s10 = sand.u32 1, %s2187_s19   ;;  %s3458_s2 = sld [smem:[#allocation39_spill]]  ;;  %vm365_vm0 = vcmask 523264  }
  0x1c   : > { %s2329_s17 = sshll.u32 %s3434_s10, 3  ;;  %s285_s11 = smul.u32 17, %s2195_s21 }
  0x1d   : > { %p286_p12 = scmp.lt.s32.totalorder %s2199_s22, 3  ;;  %s3459_s0 = sld [smem:[#allocation37_spill]] }
  0x1e   : > { %p288_p13 = scmp.lt.s32.totalorder %s285_s11, 33  ;;  %s3460_s1 = sld [smem:[#allocation38_spill]] }
  0x1f   : > { %s287_s12 = scalar_select %p286_p12, %s2199_s22, 3 }
  0x20   : > { %s3541_s11 = smov (!%p288_p13, %s285_s11), 33  ;;  %p1854_p0 = scmp.eq.s32.totalorder %s2195_s21, 0 }
  0x21   : > { %v329_v0 = vld [vmem:[%s3458_s2 + $0x70] sm:$0xff]  ;;  %v330_v1 = vld [vmem:[%s3458_s2 + $0x78] sm:$0xff]  ;;  %v327_v2 = vld [vmem:[%s3458_s2 + $0x60] sm:$0xff]  ;;  %s1827_s16 = smul.u32 34, %s287_s12  ;;  %p1816_p1 = scmp.ne.s32.totalorder %s2195_s21, 1 }
  0x22   : > { %425 = vmatpush.msra.mxu0 %v329_v0  ;;  %493 = vmatpush.msra.mxu1 %v330_v1  ;;  %v328_v3 = vld [vmem:[%s3458_s2 + $0x68] sm:$0xff]  ;;  %v325_v4 = vld [vmem:[%s3458_s2 + $0x50] sm:$0xff]  ;;  %v326_v5 = vld [vmem:[%s3458_s2 + $0x58] sm:$0xff] }
  0x23   : > { %612 = vmatpush.msra.mxu2 %v329_v0  ;;  %680 = vmatpush.msra.mxu3 %v330_v1  ;;  %v323_v6 = vld [vmem:[%s3458_s2 + $0x40] sm:$0xff]  ;;  %v324_v7 = vld [vmem:[%s3458_s2 + $0x48] sm:$0xff]  ;;  %v321_v8 = vld [vmem:[%s3458_s2 + $0x30] sm:$0xff]  ;;  %s291_s13 = sadd.s32 %s1827_s16, %s3541_s11 }
  0x24   : > { %426 = vmatpush.msra.mxu0 %v327_v2  ;;  %494 = vmatpush.msra.mxu1 %v328_v3  ;;  %v322_v9 = vld [vmem:[%s3458_s2 + $0x38] sm:$0xff]  ;;  %v319_v10 = vld [vmem:[%s3458_s2 + $0x20] sm:$0xff]  ;;  %v320_v11 = vld [vmem:[%s3458_s2 + $0x28] sm:$0xff]  ;;  %s1743_s29 = sshll.u32 %s291_s13, 3 }
  0x25   : > { %613 = vmatpush.msra.mxu2 %v327_v2  ;;  %681 = vmatpush.msra.mxu3 %v328_v3  ;;  %v317_v12 = vld [vmem:[%s3458_s2 + $0x10] sm:$0xff]  ;;  %v318_v13 = vld [vmem:[%s3458_s2 + $0x18] sm:$0xff]  ;;  %s2370_s26 = scalar_lea.vmem %s3459_s0, %s1743_s29  ;;  %v315_v14 = vld [vmem:[%s3458_s2] sm:$0xff]  ;;  %s2381_s12 = scalar_lea.vmem %s3460_s1, %s1743_s29 }
  0x26   : > { %427 = vmatpush.msra.mxu0 %v325_v4  ;;  %495 = vmatpush.msra.mxu1 %v326_v5  ;;  %v316_v15 = vld [vmem:[%s3458_s2 + $0x8] sm:$0xff]  ;;  %v331_v16 = vld [vmem:[%s2370_s26] sm:$0xff]  ;;  %v333_v20 = vld [vmem:[%s2370_s26 + $0x10] sm:$0xff]  ;;  %s2213_s29 = smov 0.0   ;;  %s3451_s0 = scalar_lea.vmem [#allocation7], %s2329_s17 }
  0x27   : > { %614 = vmatpush.msra.mxu2 %v325_v4  ;;  %682 = vmatpush.msra.mxu3 %v326_v5  ;;  %v348_v17 = vld [vmem:[%s2381_s12] sm:$0xff]  ;;  %v332_v18 = vld [vmem:[%s2370_s26 + $0x8] sm:$0xff]  ;;  %v350_v21 = vld [vmem:[%s2381_s12 + $0x10] sm:$0xff]  ;;  %1835 = sst [smem:[#allocation2]] (%p1854_p0), %s2213_s29 }
  0x28   : > { %428 = vmatpush.msra.mxu0 %v323_v6  ;;  %496 = vmatpush.msra.mxu1 %v324_v7  ;;  %v349_v19 = vld [vmem:[%s2381_s12 + $0x8] sm:$0xff]  ;;  %v334_v22 = vld [vmem:[%s2370_s26 + $0x18] sm:$0xff]  ;;  %v335_v24 = vld [vmem:[%s2370_s26 + $0x20] sm:$0xff]  ;;  %1836 = sst [smem:[#allocation2 + $0x1]] (%p1854_p0), %s2213_s29 }
  0x29   : > { %615 = vmatpush.msra.mxu2 %v323_v6  ;;  %683 = vmatpush.msra.mxu3 %v324_v7  ;;  %v351_v23 = vld [vmem:[%s2381_s12 + $0x18] sm:$0xff]  ;;  %v352_v25 = vld [vmem:[%s2381_s12 + $0x20] sm:$0xff]  ;;  %v336_v26 = vld [vmem:[%s2370_s26 + $0x28] sm:$0xff]  ;;  %1837 = sst [smem:[#allocation2 + $0x2]] (%p1854_p0), %s2213_s29  ;;  %s277_s29 = scalar_lea.vmem [#allocation5], %s2329_s17 }
  0x2a   : > { %429 = vmatpush.msra.mxu0 %v321_v8  ;;  %497 = vmatpush.msra.mxu1 %v322_v9  ;;  %v353_v27 = vld [vmem:[%s2381_s12 + $0x28] sm:$0xff]  ;;  %v337_v28 = vld [vmem:[%s2370_s26 + $0x30] sm:$0xff]  ;;  %v338_v30 = vld [vmem:[%s2370_s26 + $0x38] sm:$0xff]  ;;  %s1496_s15 = sld [smem:[#allocation2]] }
  0x2b   : > { %616 = vmatpush.msra.mxu2 %v321_v8  ;;  %684 = vmatpush.msra.mxu3 %v322_v9  ;;  %v354_v29 = vld [vmem:[%s2381_s12 + $0x30] sm:$0xff]  ;;  %v355_v31 = vld [vmem:[%s2381_s12 + $0x38] sm:$0xff]  ;;  %v339_v32 = vld [vmem:[%s2370_s26 + $0x40] sm:$0xff]  ;;  %s1814_s7 = sld [smem:[#allocation2 + $0x1]] }
  0x2c   : > { %430 = vmatpush.msra.mxu0 %v319_v10  ;;  %498 = vmatpush.msra.mxu1 %v320_v11  ;;  %v356_v33 = vld [vmem:[%s2381_s12 + $0x40] sm:$0xff]  ;;  %v340_v34 = vld [vmem:[%s2370_s26 + $0x48] sm:$0xff]  ;;  %v341_v36 = vld [vmem:[%s2370_s26 + $0x50] sm:$0xff]  ;;  %s1815_s11 = sld [smem:[#allocation2 + $0x2]] }
  0x2d   : > { %617 = vmatpush.msra.mxu2 %v319_v10  ;;  %685 = vmatpush.msra.mxu3 %v320_v11  ;;  %v357_v35 = vld [vmem:[%s2381_s12 + $0x48] sm:$0xff]  ;;  %v358_v37 = vld [vmem:[%s2381_s12 + $0x50] sm:$0xff]  ;;  %v342_v38 = vld [vmem:[%s2370_s26 + $0x58] sm:$0xff] }
  0x2e   : > { %431 = vmatpush.msra.mxu0 %v317_v12  ;;  %499 = vmatpush.msra.mxu1 %v318_v13  ;;  %v359_v39 = vld [vmem:[%s2381_s12 + $0x58] sm:$0xff]  ;;  %v343_v40 = vld [vmem:[%s2370_s26 + $0x60] sm:$0xff]  ;;  %v344_v42 = vld [vmem:[%s2370_s26 + $0x68] sm:$0xff] }
  0x2f   : > { %618 = vmatpush.msra.mxu2 %v317_v12  ;;  %686 = vmatpush.msra.mxu3 %v318_v13  ;;  %v360_v41 = vld [vmem:[%s2381_s12 + $0x60] sm:$0xff]  ;;  %v361_v43 = vld [vmem:[%s2381_s12 + $0x68] sm:$0xff]  ;;  %v345_v44 = vld [vmem:[%s2370_s26 + $0x70] sm:$0xff] }
  0x30   : > { %432 = vmatpush.msra.mxu0 %v315_v14  ;;  %500 = vmatpush.msra.mxu1 %v316_v15  ;;  %v362_v45 = vld [vmem:[%s2381_s12 + $0x70] sm:$0xff]  ;;  %v346_v46 = vld [vmem:[%s2370_s26 + $0x78] sm:$0xff]  ;;  %v347_v50 = vld [vmem:[%s2370_s26 + $0x80] sm:$0xff] }
  0x31   : > { %619 = vmatpush.msra.mxu2 %v315_v14  ;;  %687 = vmatpush.msra.mxu3 %v316_v15  ;;  %v363_v47 = vld [vmem:[%s2381_s12 + $0x78] sm:$0xff]  ;;  %v364_v53 = vld [vmem:[%s2381_s12 + $0x80] sm:$0xff]  ;;  %s270_s12 = scalar_lea.vmem [#allocation3], %s2329_s17 }
  0x32   : > { %1746 = vmatmul.msk.f32.vlgmr.msra.gmra.mxu0 %vm365_vm0, %v331_v16  ;;  %1763 = vmatmul.msk.f32.vlgmr.msra.gmra.mxu1 %vm365_vm0, %v331_v16 }
  0x33   : > { %1780 = vmatmul.msk.f32.vlgmr.msra.gmra.mxu2 %vm365_vm0, %v348_v17  ;;  %1797 = vmatmul.msk.f32.vlgmr.msra.gmra.mxu3 %vm365_vm0, %v348_v17 }
  0x3a   : > { %1747 = vmatmul.msk.f32.gmra.mxu0 %vm365_vm0, %v332_v18  ;;  %1764 = vmatmul.msk.f32.gmra.mxu1 %vm365_vm0, %v332_v18 }
  0x3b   : > { %1781 = vmatmul.msk.f32.gmra.mxu2 %vm365_vm0, %v349_v19  ;;  %1798 = vmatmul.msk.f32.gmra.mxu3 %vm365_vm0, %v349_v19 }
  0x42   : > { %1748 = vmatmul.msk.f32.gmra.mxu0 %vm365_vm0, %v333_v20  ;;  %1765 = vmatmul.msk.f32.gmra.mxu1 %vm365_vm0, %v333_v20 }
  0x43   : > { %1782 = vmatmul.msk.f32.gmra.mxu2 %vm365_vm0, %v350_v21  ;;  %1799 = vmatmul.msk.f32.gmra.mxu3 %vm365_vm0, %v350_v21 }
  0x4a   : > { %1749 = vmatmul.msk.f32.gmra.mxu0 %vm365_vm0, %v334_v22  ;;  %1766 = vmatmul.msk.f32.gmra.mxu1 %vm365_vm0, %v334_v22 }
  0x4b   : > { %1783 = vmatmul.msk.f32.gmra.mxu2 %vm365_vm0, %v351_v23  ;;  %1800 = vmatmul.msk.f32.gmra.mxu3 %vm365_vm0, %v351_v23 }
  0x52   : > { %1750 = vmatmul.msk.f32.gmra.mxu0 %vm365_vm0, %v335_v24  ;;  %1767 = vmatmul.msk.f32.gmra.mxu1 %vm365_vm0, %v335_v24 }
  0x53   : > { %1784 = vmatmul.msk.f32.gmra.mxu2 %vm365_vm0, %v352_v25  ;;  %1801 = vmatmul.msk.f32.gmra.mxu3 %vm365_vm0, %v352_v25 }
  0x5a   : > { %1751 = vmatmul.msk.f32.gmra.mxu0 %vm365_vm0, %v336_v26  ;;  %1768 = vmatmul.msk.f32.gmra.mxu1 %vm365_vm0, %v336_v26 }
  0x5b   : > { %1785 = vmatmul.msk.f32.gmra.mxu2 %vm365_vm0, %v353_v27  ;;  %1802 = vmatmul.msk.f32.gmra.mxu3 %vm365_vm0, %v353_v27 }
  0x62   : > { %1752 = vmatmul.msk.f32.gmra.mxu0 %vm365_vm0, %v337_v28  ;;  %1769 = vmatmul.msk.f32.gmra.mxu1 %vm365_vm0, %v337_v28 }
  0x63   : > { %1786 = vmatmul.msk.f32.gmra.mxu2 %vm365_vm0, %v354_v29  ;;  %1803 = vmatmul.msk.f32.gmra.mxu3 %vm365_vm0, %v354_v29 }
  0x6a   : > { %1753 = vmatmul.msk.f32.gmra.mxu0 %vm365_vm0, %v338_v30  ;;  %1770 = vmatmul.msk.f32.gmra.mxu1 %vm365_vm0, %v338_v30 }
  0x6b   : > { %1787 = vmatmul.msk.f32.gmra.mxu2 %vm365_vm0, %v355_v31  ;;  %1804 = vmatmul.msk.f32.gmra.mxu3 %vm365_vm0, %v355_v31 }
  0x72   : > { %1754 = vmatmul.msk.f32.gmra.mxu0 %vm365_vm0, %v339_v32  ;;  %1771 = vmatmul.msk.f32.gmra.mxu1 %vm365_vm0, %v339_v32 }
  0x73   : > { %1788 = vmatmul.msk.f32.gmra.mxu2 %vm365_vm0, %v356_v33  ;;  %1805 = vmatmul.msk.f32.gmra.mxu3 %vm365_vm0, %v356_v33 }
  0x7a   : > { %1755 = vmatmul.msk.f32.gmra.mxu0 %vm365_vm0, %v340_v34  ;;  %1772 = vmatmul.msk.f32.gmra.mxu1 %vm365_vm0, %v340_v34 }
  0x7b   : > { %1789 = vmatmul.msk.f32.gmra.mxu2 %vm365_vm0, %v357_v35  ;;  %1806 = vmatmul.msk.f32.gmra.mxu3 %vm365_vm0, %v357_v35 }
  0x82   : > { %1756 = vmatmul.msk.f32.gmra.mxu0 %vm365_vm0, %v341_v36  ;;  %1773 = vmatmul.msk.f32.gmra.mxu1 %vm365_vm0, %v341_v36 }
  0x83   : > { %1790 = vmatmul.msk.f32.gmra.mxu2 %vm365_vm0, %v358_v37  ;;  %1807 = vmatmul.msk.f32.gmra.mxu3 %vm365_vm0, %v358_v37 }
  0x8a   : > { %1757 = vmatmul.msk.f32.gmra.mxu0 %vm365_vm0, %v342_v38  ;;  %1774 = vmatmul.msk.f32.gmra.mxu1 %vm365_vm0, %v342_v38 }
  0x8b   : > { %1791 = vmatmul.msk.f32.gmra.mxu2 %vm365_vm0, %v359_v39  ;;  %1808 = vmatmul.msk.f32.gmra.mxu3 %vm365_vm0, %v359_v39 }
  0x92   : > { %1758 = vmatmul.msk.f32.gmra.mxu0 %vm365_vm0, %v343_v40  ;;  %1775 = vmatmul.msk.f32.gmra.mxu1 %vm365_vm0, %v343_v40 }
  0x93   : > { %1792 = vmatmul.msk.f32.gmra.mxu2 %vm365_vm0, %v360_v41  ;;  %1809 = vmatmul.msk.f32.gmra.mxu3 %vm365_vm0, %v360_v41 }
  0x9a   : > { %1759 = vmatmul.msk.f32.gmra.mxu0 %vm365_vm0, %v344_v42  ;;  %1776 = vmatmul.msk.f32.gmra.mxu1 %vm365_vm0, %v344_v42 }
  0x9b   : > { %1793 = vmatmul.msk.f32.gmra.mxu2 %vm365_vm0, %v361_v43  ;;  %1810 = vmatmul.msk.f32.gmra.mxu3 %vm365_vm0, %v361_v43 }
  0xa2   : > { %1760 = vmatmul.msk.f32.gmra.mxu0 %vm365_vm0, %v345_v44  ;;  %1777 = vmatmul.msk.f32.gmra.mxu1 %vm365_vm0, %v345_v44 }
  0xa3   : > { %1794 = vmatmul.msk.f32.gmra.mxu2 %vm365_vm0, %v362_v45  ;;  %1811 = vmatmul.msk.f32.gmra.mxu3 %vm365_vm0, %v362_v45 }
  0xaa   : > { %1761 = vmatmul.msk.f32.gmra.mxu0 %vm365_vm0, %v346_v46  ;;  %1778 = vmatmul.msk.f32.gmra.mxu1 %vm365_vm0, %v346_v46 }
  0xab   : > { %1795 = vmatmul.msk.f32.gmra.mxu2 %vm365_vm0, %v363_v47  ;;  %1812 = vmatmul.msk.f32.gmra.mxu3 %vm365_vm0, %v363_v47 }
  0xaf   : > { %v434_v48 = vpop.f32.mrf.mxu0  ;;  %v502_v49 = vpop.f32.mrf.mxu1 }
  0xb0   : > { %v740_v51 = vmul.f32 %v434_v48, %v434_v48  ;;  %v757_v52 = vmul.f32 %v502_v49, %v502_v49 }
  0xb2   : > { %v2481_v54 = vadd.f32 %v757_v52, %v740_v51  ;;  %1762 = vmatmul.msk.f32.gmra.mxu0 %vm365_vm0, %v347_v50  ;;  %1779 = vmatmul.msk.f32.gmra.mxu1 %vm365_vm0, %v347_v50 }
  0xb3   : > { %1796 = vmatmul.msk.f32.gmra.mxu2 %vm365_vm0, %v364_v53  ;;  %1813 = vmatmul.msk.f32.gmra.mxu3 %vm365_vm0, %v364_v53 }
  0xb4   : > { %v1334_v1 = vmax.f32 %v2481_v54, 1e-16  ;;  %vm1053_vm1 = vcmp.eq.f32.partialorder %v2481_v54, inf  ;;  %vm1055_vm12 = vcmp.eq.f32.partialorder %v2481_v54, 0.0 }
  0xb6   : > { %v621_v55 = vpop.f32.mrf.mxu2  ;;  %v689_v56 = vpop.f32.mrf.mxu3  ;;  %1921 = vlog2.f32 %v1334_v1 }
  0xb7   : > { %v791_v57 = vmul.f32 %v621_v55, %v621_v55  ;;  %v808_v58 = vmul.f32 %v689_v56, %v689_v56  ;;  %v437_v59 = vpop.f32.mrf.mxu0  ;;  %v505_v60 = vpop.f32.mrf.mxu1 }
  0xb8   : > { %v741_v61 = vmul.f32 %v437_v59, %v437_v59  ;;  %v758_v62 = vmul.f32 %v505_v60, %v505_v60 }
  0xb9   : > { %v2487_v63 = vadd.f32 %v808_v58, %v791_v57 }
  0xba   : > { %v2489_v0 = vadd.f32 %v758_v62, %v741_v61 }
  0xbb   : > { %3461 = vst [vmem:[#allocation11_spill] sm:$0xff] %v2487_v63  ;;  %v1385_v2 = vmax.f32 %v2487_v63, 1e-16  ;;  %vm849_vm2 = vcmp.eq.f32.partialorder %v2487_v63, inf  ;;  %vm851_vm5 = vcmp.eq.f32.partialorder %v2487_v63, 0.0 }
  0xbc   : > { %v1335_v5 = vmax.f32 %v2489_v0, 1e-16  ;;  %v1922_v16 = vpop.eup %1921  ;;  %vm1065_vm4 = vcmp.eq.f32.partialorder %v2489_v0, inf  ;;  %vm1067_vm0 = vcmp.eq.f32.partialorder %v2489_v0, 0.0 }
  0xbd   : > { %1923 = vlog2.f32 %v1385_v2  ;;  %v1352_v29 = vmul.f32 0.6931472, %v1922_v16 }
  0xbe   : > { %v624_v3 = vpop.f32.mrf.mxu2  ;;  %v692_v4 = vpop.f32.mrf.mxu3  ;;  %1925 = vlog2.f32 %v1335_v5 }
  0xbf   : > { %v792_v6 = vmul.f32 %v624_v3, %v624_v3  ;;  %v809_v7 = vmul.f32 %v692_v4, %v692_v4  ;;  %v440_v8 = vpop.f32.mrf.mxu0  ;;  %v508_v9 = vpop.f32.mrf.mxu1 }
  0xc0   : > { %v742_v10 = vmul.f32 %v440_v8, %v440_v8  ;;  %v759_v11 = vmul.f32 %v508_v9, %v508_v9 }
  0xc1   : > { %v2494_v12 = vadd.f32 %v809_v7, %v792_v6 }
  0xc2   : > { %v2496_v13 = vadd.f32 %v759_v11, %v742_v10 }
  0xc3   : > { %3462 = vst [vmem:[#allocation12_spill] sm:$0xff] %v2494_v12  ;;  %v1386_v14 = vmax.f32 %v2494_v12, 1e-16  ;;  %v1924_v19 = vpop.eup %1923  ;;  %vm861_vm3 = vcmp.eq.f32.partialorder %v2494_v12, inf  ;;  %vm863_vm6 = vcmp.eq.f32.partialorder %v2494_v12, 0.0 }
  0xc4   : > { %v1336_v15 = vmax.f32 %v2496_v13, 1e-16  ;;  %v1926_v26 = vpop.eup %1925  ;;  %v1403_v30 = vmul.f32 0.6931472, %v1924_v19 }
  0xc5   : > { %1927 = vlog2.f32 %v1386_v14  ;;  %v1354_v33 = vmul.f32 0.6931472, %v1926_v26 }
  0xc6   : > { %v627_v17 = vpop.f32.mrf.mxu2  ;;  %v695_v18 = vpop.f32.mrf.mxu3  ;;  %1929 = vlog2.f32 %v1336_v15  ;;  %v1436_v38 = vsub.f32 %v1352_v29, %v1403_v30 }
  0xc7   : > { %v793_v20 = vmul.f32 %v627_v17, %v627_v17  ;;  %v810_v21 = vmul.f32 %v695_v18, %v695_v18  ;;  %v443_v22 = vpop.f32.mrf.mxu0  ;;  %v511_v23 = vpop.f32.mrf.mxu1 }
  0xc8   : > { %v743_v24 = vmul.f32 %v443_v22, %v443_v22  ;;  %v760_v25 = vmul.f32 %v511_v23, %v511_v23  ;;  %v1453_v50 = vand.u32 2147483647, %v1436_v38 }
  0xc9   : > { %v2500_v27 = vadd.f32 %v810_v21, %v793_v20 }
  0xca   : > { %v2502_v28 = vadd.f32 %v760_v25, %v743_v24 }
  0xcb   : > { %3463 = vst [vmem:[#allocation13_spill] sm:$0xff] %v2500_v27  ;;  %v1387_v31 = vmax.f32 %v2500_v27, 1e-16  ;;  %v1928_v32 = vpop.eup %1927  ;;  %vm873_vm7 = vcmp.eq.f32.partialorder %v2500_v27, inf  ;;  %vm875_vm8 = vcmp.eq.f32.partialorder %v2500_v27, 0.0 }
  0xcc   : > { %v1337_v34 = vmax.f32 %v2502_v28, 1e-16  ;;  %v1405_v35 = vmul.f32 0.6931472, %v1928_v32  ;;  %v1930_v39 = vpop.eup %1929 }
  0xcd   : > { %1931 = vlog2.f32 %v1387_v31  ;;  %v1356_v49 = vmul.f32 0.6931472, %v1930_v39 }
  0xce   : > { %1933 = vrsqrt.f32 %v2481_v54  ;;  %v630_v36 = vpop.f32.mrf.mxu2  ;;  %v698_v37 = vpop.f32.mrf.mxu3  ;;  %v1437_v46 = vsub.f32 %v1354_v33, %v1405_v35 }
  0xcf   : > { %v794_v40 = vmul.f32 %v630_v36, %v630_v36  ;;  %v811_v41 = vmul.f32 %v698_v37, %v698_v37  ;;  %v446_v42 = vpop.f32.mrf.mxu0  ;;  %v514_v43 = vpop.f32.mrf.mxu1  ;;  %1935 = vlog2.f32 %v1337_v34 }
  0xd0   : > { %v744_v44 = vmul.f32 %v446_v42, %v446_v42  ;;  %v761_v45 = vmul.f32 %v514_v43, %v514_v43  ;;  %v1454_v51 = vand.u32 2147483647, %v1437_v46  ;;  %1937 = vrsqrt.f32 %v2487_v63 }
  0xd1   : > { %v2507_v47 = vadd.f32 %v811_v41, %v794_v40 }
  0xd2   : > { %v2509_v48 = vadd.f32 %v761_v45, %v744_v44  ;;  %v1470_v57 = vadd.f32 %v1454_v51, %v1453_v50 }
  0xd3   : > { %3464 = vst [vmem:[#allocation14_spill] sm:$0xff] %v2507_v47  ;;  %v1932_v52 = vpop.eup %1931  ;;  %v1388_v53 = vmax.f32 %v2507_v47, 1e-16  ;;  %vm885_vm9 = vcmp.eq.f32.partialorder %v2507_v47, inf  ;;  %vm887_vm10 = vcmp.eq.f32.partialorder %v2507_v47, 0.0 }
  0xd4   : > { %v2512_v55 = vpop.eup %1933  ;;  %v1407_v56 = vmul.f32 0.6931472, %v1932_v52  ;;  %v1338_v58 = vmax.f32 %v2509_v48, 1e-16 }
  0xd5   : > { %1939 = vlog2.f32 %v1388_v53  ;;  %v1936_v62 = vpop.eup %1935  ;;  %v1047_v1 = vmul.f32 %v2512_v55, %v2481_v54 }
  0xd6   : > { %1941 = vrsqrt.f32 %v2494_v12  ;;  %v633_v59 = vpop.f32.mrf.mxu2  ;;  %v701_v60 = vpop.f32.mrf.mxu3  ;;  %v1438_v61 = vsub.f32 %v1356_v49, %v1407_v56  ;;  %v1358_v14 = vmul.f32 0.6931472, %v1936_v62 }
  0xd7   : > { %v795_v2 = vmul.f32 %v633_v59, %v633_v59  ;;  %v812_v3 = vmul.f32 %v701_v60, %v701_v60  ;;  %v449_v4 = vpop.f32.mrf.mxu0  ;;  %v517_v5 = vpop.f32.mrf.mxu1  ;;  %1943 = vrsqrt.f32 %v2489_v0  ;;  %v1048_v19 = vmul.f32 %v2512_v55, %v1047_v1 }
  0xd8   : > { %v745_v6 = vmul.f32 %v449_v4, %v449_v4  ;;  %v762_v7 = vmul.f32 %v517_v5, %v517_v5  ;;  %v1455_v8 = vand.u32 2147483647, %v1438_v61  ;;  %1945 = vlog2.f32 %v1338_v58  ;;  %v2522_v10 = vpop.eup %1937 }
  0xd9   : > { %v2520_v9 = vadd.f32 %v812_v3, %v795_v2  ;;  %1947 = vrsqrt.f32 %v2496_v13  ;;  %v843_v21 = vmul.f32 %v2522_v10, %v2487_v63  ;;  %v1049_v35 = vmul.f32 0.5, %v1048_v19 }
  0xda   : > { %v2524_v11 = vadd.f32 %v762_v7, %v745_v6  ;;  %v1471_v15 = vadd.f32 %v1470_v57, %v1455_v8 }
  0xdb   : > { %3465 = vst [vmem:[#allocation15_spill] sm:$0xff] %v2520_v9  ;;  %v1940_v16 = vpop.eup %1939  ;;  %v1389_v17 = vmax.f32 %v2520_v9, 1e-16  ;;  %v844_v37 = vmul.f32 %v2522_v10, %v843_v21  ;;  %v1050_v51 = vsub.f32 1.5, %v1049_v35  ;;  %vm897_vm11 = vcmp.eq.f32.partialorder %v2520_v9, inf }
  0xdc   : > { %v2527_v18 = vpop.eup %1941  ;;  %v1409_v20 = vmul.f32 0.6931472, %v1940_v16  ;;  %v1339_v22 = vmax.f32 %v2524_v11, 1e-16  ;;  %vm899_vm13 = vcmp.eq.f32.partialorder %v2520_v9, 0.0 }
  0xdd   : > { %1949 = vlog2.f32 %v1389_v17  ;;  %v2534_v23 = vpop.eup %1943  ;;  %v855_v30 = vmul.f32 %v2527_v18, %v2494_v12  ;;  %v845_v53 = vmul.f32 0.5, %v844_v37  ;;  %v1051_v6 = vmul.f32 %v2512_v55, %v1050_v51 }
  0xde   : > { %1951 = vrsqrt.f32 %v2500_v27  ;;  %v636_v24 = vpop.f32.mrf.mxu2  ;;  %v704_v25 = vpop.f32.mrf.mxu3  ;;  %v1439_v26 = vsub.f32 %v1358_v14, %v1409_v20  ;;  %v1059_v38 = vmul.f32 %v2534_v23, %v2489_v0 }
  0xdf   : > { %v1946_v29 = vpop.eup %1945  ;;  %1953 = vrsqrt.f32 %v2502_v28  ;;  %v796_v31 = vmul.f32 %v636_v24, %v636_v24  ;;  %v813_v32 = vmul.f32 %v704_v25, %v704_v25  ;;  %v2540_v33 = vpop.f32.mrf.mxu0  ;;  %v856_v44 = vmul.f32 %v2527_v18, %v855_v30 }
  0xe0   : > { %v2542_v34 = vpop.f32.mrf.mxu1  ;;  %v1456_v36 = vand.u32 2147483647, %v1439_v26  ;;  %1955 = vlog2.f32 %v1339_v22  ;;  %v2549_v40 = vpop.eup %1947  ;;  %v1360_v41 = vmul.f32 0.6931472, %v1946_v29  ;;  %v1060_v52 = vmul.f32 %v2534_v23, %v1059_v38 }
  0xe1   : > { %v2547_v39 = vadd.f32 %v813_v32, %v796_v31  ;;  %1957 = vrsqrt.f32 %v2507_v47  ;;  %v1071_v56 = vmul.f32 %v2549_v40, %v2496_v13  ;;  %v857_v1 = vmul.f32 0.5, %v856_v44 }
  0xe2   : > { %v1472_v42 = vadd.f32 %v1471_v15, %v1456_v36  ;;  %v1061_v7 = vmul.f32 0.5, %v1060_v52  ;;  %v846_v8 = vsub.f32 1.5, %v845_v53  ;;  %v1052_v26 = vmul.f32 %v1051_v6, %v2481_v54 }
  0xe3   : > { %3466 = vst [vmem:[#allocation16_spill] sm:$0xff] %v2547_v39  ;;  %v1950_v43 = vpop.eup %1949  ;;  %v1390_v45 = vmax.f32 %v2547_v39, 1e-16  ;;  %v1072_v14 = vmul.f32 %v2549_v40, %v1071_v56  ;;  %v858_v21 = vsub.f32 1.5, %v857_v1  ;;  %v852_v44 = vand.u32 2147483648, %v2487_v63 }
  0xe4   : > { %v2554_v46 = vpop.eup %1951  ;;  %v1411_v49 = vmul.f32 0.6931472, %v1950_v43  ;;  %v1062_v29 = vsub.f32 1.5, %v1061_v7  ;;  %v847_v30 = vmul.f32 %v2522_v10, %v846_v8  ;;  %v763_v7 = vmul.f32 %v2542_v34, %v2542_v34 }
  0xe5   : > { %v2556_v50 = vpop.eup %1953  ;;  %1959 = vlog2.f32 %v1390_v45  ;;  %v867_v2 = vmul.f32 %v2554_v46, %v2500_v27  ;;  %v1073_v31 = vmul.f32 0.5, %v1072_v14  ;;  %v859_v45 = vmul.f32 %v2527_v18, %v858_v21 }
  0xe6   : > { %v639_v57 = vpop.f32.mrf.mxu2  ;;  %v707_v58 = vpop.f32.mrf.mxu3  ;;  %v1440_v59 = vsub.f32 %v1360_v41, %v1411_v49  ;;  %v1083_v3 = vmul.f32 %v2556_v50, %v2502_v28  ;;  %1961 = vrsqrt.f32 %v2509_v48  ;;  %vm909_vm14 = vcmp.eq.f32.partialorder %v2547_v39, inf }
  0xe7   : > { %v1956_v60 = vpop.eup %1955  ;;  %v2561_v61 = vpop.f32.mrf.mxu0  ;;  %1963 = vrsqrt.f32 %v2520_v9  ;;  %v868_v25 = vmul.f32 %v2554_v46, %v867_v2  ;;  %v797_v32 = vmul.f32 %v639_v57, %v639_v57  ;;  %v814_v35 = vmul.f32 %v707_v58, %v707_v58 }
  0xe8   : > { %v2563_v62 = vpop.f32.mrf.mxu1  ;;  %v1457_v4 = vand.u32 2147483647, %v1440_v59  ;;  %v2569_v5 = vpop.eup %1957  ;;  %v1362_v15 = vmul.f32 0.6931472, %v1956_v60  ;;  %v1084_v55 = vmul.f32 %v2556_v50, %v1083_v3  ;;  %1965 = vrsqrt.f32 %v2547_v39 }
  0xe9   : > { %v879_v22 = vmul.f32 %v2569_v5, %v2507_v47  ;;  %v869_v52 = vmul.f32 0.5, %v868_v25  ;;  %v2602_v57 = vsel %vm1053_vm1, %v2481_v54, %v1052_v26  ;;  %v1063_v58 = vmul.f32 %v2534_v23, %v1062_v29 }
  0xea   : > { %v1473_v16 = vadd.f32 %v1472_v42, %v1457_v4  ;;  %v1085_v49 = vmul.f32 0.5, %v1084_v55  ;;  %v1074_v60 = vsub.f32 1.5, %v1073_v31  ;;  %v2607_v1 = vadd.f32 %v814_v35, %v797_v32 }
  0xeb   : > { %v1960_v17 = vpop.eup %1959  ;;  %v880_v53 = vmul.f32 %v2569_v5, %v879_v22  ;;  %v848_v3 = vmul.f32 %v847_v30, %v2487_v63  ;;  %v746_v23 = vmul.f32 %v2540_v33, %v2540_v33  ;;  %v860_v8 = vmul.f32 %v859_v45, %v2494_v12 }
  0xec   : > { %v1413_v24 = vmul.f32 0.6931472, %v1960_v17  ;;  %v2594_v10 = vpop.eup %1961  ;;  %3467 = vst [vmem:[#allocation17_spill] sm:$0xff] %v2607_v1  ;;  %v1086_v14 = vsub.f32 1.5, %v1085_v49  ;;  %v1064_v21 = vmul.f32 %v1063_v58, %v2489_v0  ;;  %v864_v22 = vand.u32 2147483648, %v2494_v12 }
  0xed   : > { %v2597_v56 = vpop.eup %1963  ;;  %v1095_v6 = vmul.f32 %v2594_v10, %v2509_v48  ;;  %v881_v17 = vmul.f32 0.5, %v880_v53  ;;  %v1075_v33 = vmul.f32 %v2549_v40, %v1074_v60  ;;  %1967 = vrsqrt.f32 %v2607_v1 }
  0xee   : > { %v642_v36 = vpop.f32.mrf.mxu2  ;;  %v710_v37 = vpop.f32.mrf.mxu3  ;;  %v1441_v38 = vsub.f32 %v1362_v15, %v1413_v24  ;;  %v870_v15 = vsub.f32 1.5, %v869_v52  ;;  %v850_v25 = vsel %vm849_vm2, %v2487_v63, %v848_v3  ;;  %1969 = vrsqrt.f32 %v2524_v11 }
  0xef   : > { %v2587_v42 = vpop.f32.mrf.mxu0  ;;  %v798_v18 = vmul.f32 %v642_v36, %v642_v36  ;;  %v815_v59 = vmul.f32 %v710_v37, %v710_v37  ;;  %v2612_v4 = vpop.eup %1965  ;;  %v1096_v29 = vmul.f32 %v2594_v10, %v1095_v6  ;;  %v2637_v30 = vadd.f32 %v763_v7, %v746_v23 }
  0xf0   : > { %v2589_v43 = vpop.f32.mrf.mxu1  ;;  %v1458_v51 = vand.u32 2147483647, %v1441_v38  ;;  %v903_v26 = vmul.f32 %v2612_v4, %v2547_v39  ;;  %v862_v32 = vsel %vm861_vm3, %v2494_v12, %v860_v8  ;;  %v1087_v35 = vmul.f32 %v2556_v50, %v1086_v14 }
  0xf1   : > { %v2624_v55 = vadd.f32 %v815_v59, %v798_v18  ;;  %v871_v36 = vmul.f32 %v2554_v46, %v870_v15  ;;  %v882_v37 = vsub.f32 1.5, %v881_v17  ;;  %v747_v45 = vmul.f32 %v2561_v61, %v2561_v61 }
  0xf2   : > { %v2609_v2 = vadd.f32 %v1473_v16, %v1458_v51  ;;  %v891_v16 = vmul.f32 %v2597_v56, %v2520_v9  ;;  %v764_v49 = vmul.f32 %v2563_v62, %v2563_v62  ;;  %v1340_v51 = vmax.f32 %v2637_v30, 1e-16 }
  0xf3   : > { %3468 = vst [vmem:[#allocation18_spill] sm:$0xff] %v2624_v55  ;;  %1971 = vrsqrt.f32 %v2624_v55  ;;  %v2659_v50 = vsel %vm1065_vm4, %v2489_v0, %v1064_v21  ;;  %v1391_v46 = vmax.f32 %v2607_v1, 1e-16  ;;  %v2664_v52 = vsel %vm851_vm5, %v852_v44, %v850_v25  ;;  %v2672_v59 = vpop.eup %1967 }
  0xf4   : > { %v892_v38 = vmul.f32 %v2597_v56, %v891_v16  ;;  %3469 = vst [vmem:[#allocation19_spill] sm:$0xff] %v2664_v52  ;;  %v904_v61 = vmul.f32 %v2612_v4, %v903_v26  ;;  %v2668_v53 = vmul.f32 %v1075_v33, %v2496_v13  ;;  %v2670_v62 = vmul.f32 0.5, %v1096_v29  ;;  %v2683_v23 = vpop.eup %1969 }
  0xf5   : > { %v2675_v60 = vmul.f32 %v1087_v35, %v2502_v28  ;;  %v2679_v3 = vsel %vm863_vm6, %v864_v22, %v862_v32  ;;  %v876_v44 = vand.u32 2147483648, %v2500_v27  ;;  %v2685_v7 = vadd.f32 %v764_v49, %v747_v45 }
  0xf6   : > { %v645_v34 = vpop.f32.mrf.mxu2  ;;  %v713_v24 = vpop.f32.mrf.mxu3  ;;  %3470 = vst [vmem:[#allocation20_spill] sm:$0xff] %v2679_v3  ;;  %v893_v6 = vmul.f32 0.5, %v892_v38  ;;  %1973 = vlog2.f32 %v1340_v51  ;;  %v872_v8 = vmul.f32 %v871_v36, %v2500_v27  ;;  %v883_v14 = vmul.f32 %v2569_v5, %v882_v37 }
  0xf7   : > { %v2639_v31 = vpop.f32.mrf.mxu0  ;;  %v799_v58 = vmul.f32 %v645_v34, %v645_v34  ;;  %v816_v18 = vmul.f32 %v713_v24, %v713_v24  ;;  %v748_v15 = vmul.f32 %v2587_v42, %v2587_v42  ;;  %v765_v17 = vmul.f32 %v2589_v43, %v2589_v43 }
  0xf8   : > { %v2641_v40 = vpop.f32.mrf.mxu1  ;;  %1975 = vlog2.f32 %v1391_v46  ;;  %v905_v22 = vmul.f32 0.5, %v904_v61  ;;  %v915_v5 = vmul.f32 %v2672_v59, %v2607_v1  ;;  %v1107_v42 = vmul.f32 %v2683_v23, %v2524_v11 }
  0xf9   : > { %v2693_v33 = vpop.eup %1971  ;;  %v2696_v24 = vadd.f32 %v816_v18, %v799_v58  ;;  %1977 = vrsqrt.f32 %v2637_v30  ;;  %v1341_v43 = vmax.f32 %v2685_v7, 1e-16  ;;  %v894_v29 = vsub.f32 1.5, %v893_v6 }
  0xfa   : > { %v1392_v32 = vmax.f32 %v2624_v55, 1e-16  ;;  %v874_v35 = vsel %vm873_vm7, %v2500_v27, %v872_v8  ;;  %v884_v36 = vmul.f32 %v883_v14, %v2507_v47  ;;  %1979 = vrsqrt.f32 %v2685_v7 }
  0xfb   : > { %3471 = vst [vmem:[#allocation21_spill] sm:$0xff] %v2696_v24  ;;  %v2716_v37 = vadd.f32 %v765_v17, %v748_v15  ;;  %v906_v38 = vsub.f32 1.5, %v905_v22  ;;  %v927_v45 = vmul.f32 %v2693_v33, %v2624_v55  ;;  %1981 = vrsqrt.f32 %v2696_v24 }
  0xfc   : > { %v1974_v49 = vpop.eup %1973  ;;  %v916_v61 = vmul.f32 %v2672_v59, %v915_v5  ;;  %v2723_v18 = vmul.f32 %v2683_v23, %v1107_v42  ;;  %1983 = vlog2.f32 %v1341_v43  ;;  %v888_v6 = vand.u32 2147483648, %v2507_v47 }
  0xfd   : > { %v895_v8 = vmul.f32 %v2597_v56, %v894_v29  ;;  %v1342_v14 = vmax.f32 %v2716_v37, 1e-16  ;;  %1985 = vlog2.f32 %v1392_v32  ;;  %v2730_v15 = vsel %vm875_vm8, %v876_v44, %v874_v35 }
  0xfe   : > { %v648_v16 = vpop.f32.mrf.mxu2  ;;  %v716_v21 = vpop.f32.mrf.mxu3  ;;  %3472 = vst [vmem:[#allocation22_spill] sm:$0xff] %v2730_v15  ;;  %v1393_v22 = vmax.f32 %v2696_v24, 1e-16  ;;  %v886_v5 = vsel %vm885_vm9, %v2507_v47, %v884_v36  ;;  %v907_v56 = vmul.f32 %v2612_v4, %v906_v38  ;;  %v928_v42 = vmul.f32 %v2693_v33, %v927_v45 }
  0xff   : > { %v2698_v25 = vpop.f32.mrf.mxu0  ;;  %v800_v51 = vmul.f32 %v648_v16, %v648_v16  ;;  %v817_v46 = vmul.f32 %v716_v21, %v716_v21  ;;  %v1976_v58 = vpop.eup %1975  ;;  %v1364_v32 = vmul.f32 0.6931472, %v1974_v49  ;;  %v917_v34 = vmul.f32 0.5, %v916_v61 }
 0x100   : > { %v2700_v26 = vpop.f32.mrf.mxu1  ;;  %v2733_v17 = vpop.eup %1977  ;;  %v1415_v35 = vmul.f32 0.6931472, %v1976_v58  ;;  %v749_v36 = vmul.f32 %v2639_v31, %v2639_v31  ;;  %v766_v4 = vmul.f32 %v2641_v40, %v2641_v40  ;;  %v896_v38 = vmul.f32 %v895_v8, %v2520_v9 }
 0x101   : > { %v2741_v43 = vadd.f32 %v817_v46, %v800_v51  ;;  %v2747_v41 = vpop.eup %1979  ;;  %v2760_v49 = vmul.f32 %v2733_v17, %v2637_v30  ;;  %1987 = vlog2.f32 %v1342_v14  ;;  %v900_v51 = vand.u32 2147483648, %v2520_v9 }
 0x102   : > { %v2756_v45 = vpop.eup %1981  ;;  %1989 = vlog2.f32 %v1393_v22  ;;  %v2766_v31 = vsel %vm887_vm10, %v888_v6, %v886_v5  ;;  %v908_v40 = vmul.f32 %v907_v56, %v2547_v39  ;;  %v929_v61 = vmul.f32 0.5, %v928_v42 }
 0x103   : > { %3473 = vst [vmem:[#allocation23_spill] sm:$0xff] %v2741_v43  ;;  %v1984_v46 = vpop.eup %1983  ;;  %v1442_v8 = vsub.f32 %v1364_v32, %v1415_v35  ;;  %vm911_vm15 = vcmp.eq.f32.partialorder %v2547_v39, 0.0  ;;  %v918_v20 = vsub.f32 1.5, %v917_v34  ;;  %1991 = vrsqrt.f32 %v2741_v43 }
 0x104   : > { %3474 = vst [vmem:[#allocation24_spill] sm:$0xff] %v2766_v31  ;;  %v1986_v58 = vpop.eup %1985  ;;  %vm1077_vm1 = vcmp.eq.f32.partialorder %v2496_v13, inf  ;;  %v2773_v14 = vadd.f32 %v766_v4, %v749_v36  ;;  %v898_v6 = vsel %vm897_vm11, %v2520_v9, %v896_v38  ;;  %v912_v22 = vand.u32 2147483648, %v2547_v39 }
 0x105   : > { %v939_v5 = vmul.f32 %v2756_v45, %v2696_v24  ;;  %v2783_v34 = vmul.f32 %v2747_v41, %v2685_v7  ;;  %1993 = vrsqrt.f32 %v2716_v37  ;;  %v1366_v56 = vmul.f32 0.6931472, %v1984_v46 }
 0x106   : > { %v651_v16 = vpop.f32.mrf.mxu2  ;;  %v719_v21 = vpop.f32.mrf.mxu3  ;;  %v1343_v36 = vmax.f32 %v2773_v14, 1e-16  ;;  %v1417_v4 = vmul.f32 0.6931472, %v1986_v58  ;;  %v910_v38 = vsel %vm909_vm14, %v2547_v39, %v908_v40  ;;  %vm921_vm2 = vcmp.eq.f32.partialorder %v2607_v1, inf }
 0x107   : > { %v2743_v44 = vpop.f32.mrf.mxu0  ;;  %v930_v19 = vsub.f32 1.5, %v929_v61  ;;  %v1988_v47 = vpop.eup %1987  ;;  %v750_v27 = vmul.f32 %v2698_v25, %v2698_v25  ;;  %v1459_v42 = vand.u32 2147483647, %v1442_v8  ;;  %v2800_v63 = vsel %vm899_vm13, %v900_v51, %v898_v6 }
 0x108   : > { %v2745_v29 = vpop.f32.mrf.mxu1  ;;  %3475 = vst [vmem:[#allocation25_spill] sm:$0xff] %v2800_v63  ;;  %v919_v58 = vmul.f32 %v2672_v59, %v918_v20  ;;  %v1990_v31 = vpop.eup %1989  ;;  %v767_v40 = vmul.f32 %v2700_v26, %v2700_v26  ;;  %v801_v61 = vmul.f32 %v651_v16, %v651_v16  ;;  %v818_v15 = vmul.f32 %v719_v21, %v719_v21 }
 0x109   : > { %v940_v52 = vmul.f32 %v2756_v45, %v939_v5  ;;  %v2806_v25 = vpop.eup %1991  ;;  %v2810_v3 = vsel %vm911_vm15, %v912_v22, %v910_v38  ;;  %vm923_vm3 = vcmp.eq.f32.partialorder %v2607_v1, 0.0  ;;  %vm933_vm4 = vcmp.eq.f32.partialorder %v2624_v55, inf }
 0x10a   : > { %3476 = vst [vmem:[#allocation26_spill] sm:$0xff] %v2810_v3  ;;  %v936_v20 = vand.u32 2147483648, %v2624_v55  ;;  %v3477_v59 = vand.u32 2147483648, %v2481_v54  ;;  %1995 = vlog2.f32 %v1343_v36  ;;  %v1394_v16 = vmax.f32 %v2741_v43, 1e-16 }
 0x10b   : > { %v1443_v21 = vsub.f32 %v1366_v56, %v1417_v4  ;;  %v931_v51 = vmul.f32 %v2693_v33, %v930_v19  ;;  %v2824_v8 = vpop.eup %1993  ;;  %v1368_v6 = vmul.f32 0.6931472, %v1988_v47  ;;  %v1419_v22 = vmul.f32 0.6931472, %v1990_v31 }
 0x10c   : > { %v2820_v26 = vsel %vm1055_vm12, %v3477_v59, %v2602_v57  ;;  %v1475_v5 = vadd.f32 %v2609_v2, %v1459_v42  ;;  %v920_v38 = vmul.f32 %v919_v58, %v2607_v1  ;;  %v2828_v39 = vadd.f32 %v767_v40, %v750_v27 }
 0x10d   : > { %3478 = vst [vmem:[#allocation27_spill] sm:$0xff] %v2820_v26  ;;  %v2830_v9 = vadd.f32 %v818_v15, %v801_v61  ;;  %vm935_vm5 = vcmp.eq.f32.partialorder %v2624_v55, 0.0  ;;  %v941_v54 = vmul.f32 0.5, %v940_v52  ;;  %v951_v57 = vmul.f32 %v2806_v25, %v2741_v43 }
 0x10e   : > { %v654_v32 = vpop.f32.mrf.mxu2  ;;  %v722_v35 = vpop.f32.mrf.mxu3  ;;  %1997 = vrsqrt.f32 %v2773_v14  ;;  %v3479_v47 = vand.u32 2147483648, %v2489_v0  ;;  %v1078_v27 = vsel %vm1077_vm1, %v2496_v13, %v2668_v53  ;;  %v1344_v15 = vmax.f32 %v2828_v39, 1e-16 }
 0x10f   : > { %v2794_v12 = vpop.f32.mrf.mxu0  ;;  %1999 = vlog2.f32 %v1394_v16  ;;  %v1460_v31 = vand.u32 2147483647, %v1443_v21  ;;  %v932_v56 = vmul.f32 %v931_v51, %v2624_v55  ;;  %v751_v42 = vmul.f32 %v2743_v44, %v2743_v44 }
 0x110   : > { %v2796_v46 = vpop.f32.mrf.mxu1  ;;  %v2842_v2 = vsel %vm1067_vm0, %v3479_v47, %v2659_v50  ;;  %v768_v0 = vmul.f32 %v2745_v29, %v2745_v29  ;;  %v1444_v4 = vsub.f32 %v1368_v6, %v1419_v22  ;;  %v922_v53 = vsel %vm921_vm2, %v2607_v1, %v920_v38  ;;  %v1996_v58 = vpop.eup %1995 }
 0x111   : > { %3480 = vst [vmem:[#allocation28_spill] sm:$0xff] %v2842_v2  ;;  %v942_v40 = vsub.f32 1.5, %v941_v54  ;;  %v952_v61 = vmul.f32 %v2806_v25, %v951_v57  ;;  %2001 = vrsqrt.f32 %v2830_v9  ;;  %vm1079_vm6 = vcmp.eq.f32.partialorder %v2496_v13, 0.0 }
 0x112   : > { %2003 = vrsqrt.f32 %v2828_v39  ;;  %v802_v44 = vmul.f32 %v654_v32, %v654_v32  ;;  %v819_v59 = vmul.f32 %v722_v35, %v722_v35  ;;  %vm1089_vm7 = vcmp.eq.f32.partialorder %v2502_v28, inf }
 0x113   : > { %2005 = vlog2.f32 %v1344_v15  ;;  %v1476_v29 = vadd.f32 %v1475_v5, %v1460_v31  ;;  %v3481_v16 = vand.u32 2147483648, %v2607_v1  ;;  %v934_v51 = vsel %vm933_vm4, %v2624_v55, %v932_v56 }
 0x114   : > { %v2871_v6 = vpop.eup %1997  ;;  %v2873_v22 = vadd.f32 %v768_v0, %v751_v42  ;;  %v2875_v32 = vmul.f32 0.6931472, %v1996_v58  ;;  %v1395_v35 = vmax.f32 %v2830_v9, 1e-16  ;;  %v1461_v38 = vand.u32 2147483647, %v1444_v4 }
 0x115   : > { %v2866_v21 = vsel %vm923_vm3, %v3481_v16, %v922_v53  ;;  %vm945_vm8 = vcmp.eq.f32.partialorder %v2696_v24, inf  ;;  %v2000_v5 = vpop.eup %1999  ;;  %v752_v54 = vmul.f32 %v2794_v12, %v2794_v12  ;;  %v769_v57 = vmul.f32 %v2796_v46, %v2796_v46 }
 0x116   : > { %v657_v52 = vpop.f32.mrf.mxu2  ;;  %v725_v33 = vpop.f32.mrf.mxu3  ;;  %3482 = vst [vmem:[#allocation29_spill] sm:$0xff] %v2866_v21  ;;  %v943_v47 = vmul.f32 %v2756_v45, %v942_v40  ;;  %v953_v15 = vmul.f32 0.5, %v952_v61  ;;  %v2884_v31 = vadd.f32 %v819_v59, %v802_v44  ;;  %v2888_v56 = vsel %vm935_vm5, %v936_v20, %v934_v51 }
 0x117   : > { %v473_v50 = vpop.f32.mrf.mxu0  ;;  %3483 = vst [vmem:[#allocation30_spill] sm:$0xff] %v2888_v56  ;;  %v3484_v0 = vand.u32 2147483648, %v2496_v13  ;;  %v2897_v12 = vpop.eup %2001  ;;  %v803_v46 = vmul.f32 %v657_v52, %v657_v52  ;;  %v820_v53 = vmul.f32 %v725_v33, %v725_v33  ;;  %v1090_v20 = vsel %vm1089_vm7, %v2502_v28, %v2675_v60 }
 0x118   : > { %v541_v36 = vpop.f32.mrf.mxu1  ;;  %vm1091_vm9 = vcmp.eq.f32.partialorder %v2502_v28, 0.0  ;;  %v2904_v40 = vpop.eup %2003  ;;  %v1345_v13 = vmax.f32 %v2873_v22, 1e-16  ;;  %2007 = vlog2.f32 %v1395_v35  ;;  %v2907_v59 = vadd.f32 %v1476_v29, %v1461_v38 }
 0x119   : > { %v2895_v4 = vsel %vm1079_vm6, %v3484_v0, %v1078_v27  ;;  %v1421_v27 = vmul.f32 0.6931472, %v2000_v5  ;;  %v2006_v52 = vpop.eup %2005  ;;  %2009 = vrsqrt.f32 %v2873_v22  ;;  %v2910_v33 = vadd.f32 %v769_v57, %v752_v54 }
 0x11a   : > { %3485 = vst [vmem:[#allocation31_spill] sm:$0xff] %v2895_v4  ;;  %v944_v16 = vmul.f32 %v943_v47, %v2696_v24  ;;  %v954_v60 = vsub.f32 1.5, %v953_v15  ;;  %v753_v51 = vmul.f32 %v473_v50, %v473_v50  ;;  %v1396_v0 = vmax.f32 %v2884_v31, 1e-16 }
 0x11b   : > { %v963_v42 = vmul.f32 %v2897_v12, %v2830_v9  ;;  %2011 = vrsqrt.f32 %v2884_v31  ;;  %v2917_v5 = vadd.f32 %v820_v53, %v803_v46  ;;  %v770_v29 = vmul.f32 %v541_v36, %v541_v36 }
 0x11c   : > { %vm947_vm10 = vcmp.eq.f32.partialorder %v2696_v24, 0.0  ;;  %v2920_v54 = vmul.f32 0.6931472, %v2006_v52  ;;  %2013 = vlog2.f32 %v1345_v13  ;;  %v1445_v57 = vsub.f32 %v2875_v32, %v1421_v27 }
 0x11d   : > { %v1092_v50 = vand.u32 2147483648, %v2502_v28  ;;  %v1346_v47 = vmax.f32 %v2910_v33, 1e-16  ;;  %v946_v15 = vsel %vm945_vm8, %v2696_v24, %v944_v16  ;;  %v955_v46 = vmul.f32 %v2806_v25, %v954_v60 }
 0x11e   : > { %v660_v45 = vpop.f32.mrf.mxu2  ;;  %v728_v58 = vpop.f32.mrf.mxu3  ;;  %vm957_vm11 = vcmp.eq.f32.partialorder %v2741_v43, inf  ;;  %v964_v13 = vmul.f32 %v2897_v12, %v963_v42  ;;  %v2938_v52 = vadd.f32 %v770_v29, %v753_v51  ;;  %v1397_v36 = vmax.f32 %v2917_v5, 1e-16 }
 0x11f   : > { %v476_v61 = vpop.f32.mrf.mxu0  ;;  %v804_v35 = vmul.f32 %v660_v45, %v660_v45  ;;  %v821_v38 = vmul.f32 %v728_v58, %v728_v58  ;;  %v2008_v53 = vpop.eup %2007  ;;  %v2934_v32 = vsel %vm1091_vm9, %v1092_v50, %v1090_v20  ;;  %2015 = vlog2.f32 %v1396_v0 }
 0x120   : > { %v544_v44 = vpop.f32.mrf.mxu1  ;;  %v754_v45 = vmul.f32 %v476_v61, %v476_v61  ;;  %3486 = vst [vmem:[#allocation32_spill] sm:$0xff] %v2934_v32  ;;  %v2936_v27 = vpop.eup %2009  ;;  %v1462_v28 = vand.u32 2147483647, %v1445_v57  ;;  %2017 = vrsqrt.f32 %v2917_v5  ;;  %v1347_v20 = vmax.f32 %v2938_v52, 1e-16 }
 0x121   : > { %v771_v58 = vmul.f32 %v544_v44, %v544_v44  ;;  %v2940_v16 = vadd.f32 %v821_v38, %v804_v35  ;;  %v2943_v61 = vpop.eup %2011  ;;  %2019 = vlog2.f32 %v1346_v47  ;;  %v1423_v51 = vmul.f32 0.6931472, %v2008_v53 }
 0x122   : > { %v956_v29 = vmul.f32 %v955_v46, %v2741_v43  ;;  %v2014_v35 = vpop.eup %2013  ;;  %2021 = vlog2.f32 %v1397_v36  ;;  %v975_v57 = vmul.f32 %v2943_v61, %v2884_v31  ;;  %v3487_v46 = vand.u32 2147483648, %v2696_v24 }
 0x123   : > { %v2948_v38 = vadd.f32 %v771_v58, %v754_v45  ;;  %2023 = vrsqrt.f32 %v2910_v33  ;;  %vm959_vm12 = vcmp.eq.f32.partialorder %v2741_v43, 0.0  ;;  %v2967_v45 = vmul.f32 0.6931472, %v2014_v35 }
 0x124   : > { %v2961_v53 = vsel %vm947_vm10, %v3487_v46, %v946_v15  ;;  %v1446_v58 = vsub.f32 %v2920_v54, %v1423_v51  ;;  %2025 = vrsqrt.f32 %v2940_v16  ;;  %vm1101_vm13 = vcmp.eq.f32.partialorder %v2509_v48, inf }
 0x125   : > { %v1348_v47 = vmax.f32 %v2948_v38, 1e-16  ;;  %3488 = vst [vmem:[#allocation33_spill] sm:$0xff] %v2961_v53  ;;  %v2016_v36 = vpop.eup %2015  ;;  %2027 = vlog2.f32 %v1347_v20  ;;  %vm969_vm14 = vcmp.eq.f32.partialorder %v2830_v9, inf  ;;  %vm971_vm15 = vcmp.eq.f32.partialorder %v2830_v9, 0.0 }
 0x126   : > { %v663_v25 = vpop.f32.mrf.mxu2  ;;  %v731_v60 = vpop.f32.mrf.mxu3  ;;  %v1463_v63 = vand.u32 2147483647, %v1446_v58  ;;  %vm1103_vm0 = vcmp.eq.f32.partialorder %v2509_v48, 0.0  ;;  %vm981_vm1 = vcmp.eq.f32.partialorder %v2884_v31, inf  ;;  %vm983_vm2 = vcmp.eq.f32.partialorder %v2884_v31, 0.0 }
 0x127   : > { %v805_v44 = vmul.f32 %v663_v25, %v663_v25  ;;  %v822_v19 = vmul.f32 %v731_v60, %v731_v60  ;;  %v479_v42 = vpop.f32.mrf.mxu0  ;;  %v1398_v25 = vmax.f32 %v2940_v16, 1e-16  ;;  %v965_v60 = vmul.f32 0.5, %v964_v13  ;;  %v2975_v15 = vpop.eup %2017 }
 0x128   : > { %v547_v55 = vpop.f32.mrf.mxu1  ;;  %v755_v0 = vmul.f32 %v479_v42, %v479_v42  ;;  %v2971_v13 = vadd.f32 %v2907_v59, %v1462_v28  ;;  %v2020_v42 = vpop.eup %2019  ;;  %v958_v59 = vsel %vm957_vm11, %v2741_v43, %v956_v29  ;;  %v976_v28 = vmul.f32 %v2943_v61, %v975_v57 }
 0x129   : > { %v2950_v50 = vadd.f32 %v822_v19, %v805_v44  ;;  %v772_v1 = vmul.f32 %v547_v55, %v547_v55  ;;  %v3489_v55 = vsub.f32 1.5, %v2670_v62  ;;  %2029 = vlog2.f32 %v1398_v25  ;;  %v2022_v24 = vpop.eup %2021 }
 0x12a   : > { %v966_v54 = vsub.f32 1.5, %v965_v60  ;;  %2031 = vlog2.f32 %v1348_v47  ;;  %v987_v25 = vmul.f32 %v2975_v15, %v2917_v5  ;;  %v2989_v56 = vpop.eup %2023  ;;  %v1109_v57 = vmul.f32 0.5, %v2723_v18 }
 0x12b   : > { %v1099_v19 = vmul.f32 %v2594_v10, %v3489_v55  ;;  %v2977_v44 = vadd.f32 %v772_v1, %v755_v0  ;;  %v1399_v62 = vmax.f32 %v2950_v50, 1e-16  ;;  %2033 = vrsqrt.f32 %v2950_v50  ;;  %v2996_v47 = vpop.eup %2025 }
 0x12c   : > { %v2028_v21 = vpop.eup %2027  ;;  %v1479_v26 = vadd.f32 %v2971_v13, %v1463_v63  ;;  %vm993_vm3 = vcmp.eq.f32.partialorder %v2917_v5, inf  ;;  %vm995_vm4 = vcmp.eq.f32.partialorder %v2917_v5, 0.0  ;;  %vm1113_vm5 = vcmp.eq.f32.partialorder %v2524_v11, inf }
 0x12d   : > { %3490 = vst [vmem:[#allocation34_spill] sm:$0xff] %v2977_v44  ;;  %v1349_v20 = vmax.f32 %v2977_v44, 1e-16  ;;  %2035 = vlog2.f32 %v1399_v62  ;;  %v1100_v60 = vmul.f32 %v1099_v19, %v2509_v48  ;;  %v1427_v62 = vmul.f32 0.6931472, %v2022_v24 }
 0x12e   : > { %v666_v35 = vpop.f32.mrf.mxu2  ;;  %v734_v46 = vpop.f32.mrf.mxu3  ;;  %v3492_v19 = vand.u32 2147483648, %v2741_v43  ;;  %v1378_v32 = vmul.f32 0.6931472, %v2028_v21  ;;  %v996_v44 = vand.u32 2147483648, %v2917_v5  ;;  %vm1115_vm6 = vcmp.eq.f32.partialorder %v2524_v11, 0.0 }
 0x12f   : > { %v806_v51 = vmul.f32 %v666_v35, %v666_v35  ;;  %v823_v55 = vmul.f32 %v734_v46, %v734_v46  ;;  %v482_v1 = vpop.f32.mrf.mxu0  ;;  %v1376_v35 = vmul.f32 0.6931472, %v2020_v42  ;;  %v1425_v46 = vmul.f32 0.6931472, %v2016_v36 }
 0x130   : > { %v550_v0 = vpop.f32.mrf.mxu1  ;;  %v756_v10 = vmul.f32 %v482_v1, %v482_v1  ;;  %v967_v1 = vmul.f32 %v2897_v12, %v966_v54  ;;  %2037 = vlog2.f32 %v1349_v20  ;;  %v3006_v18 = vsel %vm959_vm12, %v3492_v19, %v958_v59 }
 0x131   : > { %v773_v53 = vmul.f32 %v550_v0, %v550_v0  ;;  %v2991_v29 = vadd.f32 %v823_v55, %v806_v51  ;;  %v977_v0 = vmul.f32 0.5, %v976_v28  ;;  %v2030_v55 = vpop.eup %2029  ;;  %3493 = vst [vmem:[#allocation36_spill] sm:$0xff] %v3006_v18  ;;  %v988_v36 = vmul.f32 %v2975_v15, %v987_v25 }
 0x132   : > { %v2032_v12 = vpop.eup %2031  ;;  %v1102_v24 = vsel %vm1101_vm13, %v2509_v48, %v1100_v60  ;;  %v1447_v54 = vsub.f32 %v2967_v45, %v1425_v46  ;;  %v968_v28 = vmul.f32 %v967_v1, %v2830_v9  ;;  %v1104_v20 = vand.u32 2147483648, %v2509_v48 }
 0x133   : > { %v2999_v3 = vadd.f32 %v773_v53, %v756_v10  ;;  %v1400_v51 = vmax.f32 %v2991_v29, 1e-16  ;;  %2039 = vrsqrt.f32 %v2991_v29  ;;  %v999_v10 = vmul.f32 %v2996_v47, %v2940_v16  ;;  %v3016_v58 = vpop.eup %2033 }
 0x134   : > { %v1110_v25 = vsub.f32 1.5, %v1109_v57  ;;  %v1448_v18 = vsub.f32 %v1376_v35, %v1427_v62  ;;  %v978_v60 = vsub.f32 1.5, %v977_v0  ;;  %v1429_v4 = vmul.f32 0.6931472, %v2030_v55 }
 0x135   : > { %3491 = vst [vmem:[#allocation35_spill] sm:$0xff] %v2999_v3  ;;  %v1350_v53 = vmax.f32 %v2999_v3, 1e-16  ;;  %2041 = vlog2.f32 %v1400_v51  ;;  %v2036_v51 = vpop.eup %2035  ;;  %v989_v2 = vmul.f32 0.5, %v988_v36  ;;  %v1000_v1 = vmul.f32 %v2996_v47, %v999_v10 }
 0x136   : > { %v669_v42 = vpop.f32.mrf.mxu2  ;;  %v737_v59 = vpop.f32.mrf.mxu3  ;;  %v1011_v3 = vmul.f32 %v3016_v58, %v2950_v50  ;;  %v1464_v35 = vand.u32 2147483647, %v1447_v54  ;;  %v970_v21 = vsel %vm969_vm14, %v2830_v9, %v968_v28  ;;  %v1465_v13 = vand.u32 2147483647, %v1448_v18 }
 0x137   : > { %v807_v19 = vmul.f32 %v669_v42, %v669_v42  ;;  %v824_v43 = vmul.f32 %v737_v59, %v737_v59  ;;  %v2038_v45 = vpop.eup %2037  ;;  %2043 = vlog2.f32 %v1350_v53  ;;  %v1380_v42 = vmul.f32 0.6931472, %v2032_v12 }
 0x138   : > { %v1431_v59 = vmul.f32 0.6931472, %v2036_v51  ;;  %v979_v0 = vmul.f32 %v2943_v61, %v978_v60  ;;  %v1111_v62 = vmul.f32 %v2683_v23, %v1110_v25  ;;  %v1382_v55 = vmul.f32 0.6931472, %v2038_v45 }
 0x139   : > { %v3024_v46 = vadd.f32 %v824_v43, %v807_v19  ;;  %v3029_v57 = vpop.eup %2039  ;;  %v1449_v53 = vsub.f32 %v1378_v32, %v1429_v4  ;;  %v1120_v12 = vmul.f32 %v2733_v17, %v2760_v49  ;;  %v990_v10 = vsub.f32 1.5, %v989_v2 }
 0x13a   : > { %v1001_v54 = vmul.f32 0.5, %v1000_v1  ;;  %v1012_v28 = vmul.f32 %v3016_v58, %v1011_v3  ;;  %v1450_v51 = vsub.f32 %v1380_v42, %v1431_v59  ;;  %v1480_v19 = vadd.f32 %v1479_v26, %v1464_v35 }
 0x13b   : > { %v2042_v63 = vpop.eup %2041  ;;  %v1401_v43 = vmax.f32 %v3024_v46, 1e-16  ;;  %v1023_v61 = vmul.f32 %v3029_v57, %v2991_v29  ;;  %v3494_v23 = vand.u32 2147483648, %v2830_v9  ;;  %v980_v49 = vmul.f32 %v979_v0, %v2884_v31 }
 0x13c   : > { %v1433_v36 = vmul.f32 0.6931472, %v2042_v63  ;;  %v3054_v3 = vsel %vm1103_vm0, %v1104_v20, %v1102_v24  ;;  %v1112_v26 = vmul.f32 %v1111_v62, %v2524_v11  ;;  %v1466_v32 = vand.u32 2147483647, %v1449_v53 }
 0x13d   : > { %2045 = vlog2.f32 %v1401_v43  ;;  %v2044_v18 = vpop.eup %2043  ;;  %v3048_v4 = vsel %vm971_vm15, %v3494_v23, %v970_v21  ;;  %v1481_v25 = vadd.f32 %v1480_v19, %v1465_v13  ;;  %v1121_v60 = vmul.f32 0.5, %v1120_v12 }
 0x13e   : > { %v1451_v2 = vsub.f32 %v1382_v55, %v1433_v36  ;;  %v991_v45 = vmul.f32 %v2975_v15, %v990_v10  ;;  %v1002_v1 = vsub.f32 1.5, %v1001_v54  ;;  %v1013_v42 = vmul.f32 0.5, %v1012_v28 }
 0x13f   : > { %v1132_v59 = vmul.f32 %v2747_v41, %v2783_v34  ;;  %v1384_v35 = vmul.f32 0.6931472, %v2044_v18  ;;  %v1467_v21 = vand.u32 2147483647, %v1450_v51  ;;  %v1024_v48 = vmul.f32 %v3029_v57, %v1023_v61 }
 0x140   : > { %2047 = vrsqrt.f32 %v3024_v46  ;;  %v982_v20 = vsel %vm981_vm1, %v2884_v31, %v980_v49  ;;  %v1143_v34 = vmul.f32 %v2824_v8, %v2716_v37  ;;  %v1468_v63 = vand.u32 2147483647, %v1451_v2 }
 0x141   : > { %v1482_v43 = vadd.f32 %v1481_v25, %v1466_v32  ;;  %vm1005_vm7 = vcmp.eq.f32.partialorder %v2940_v16, inf  ;;  %v1122_v13 = vsub.f32 1.5, %v1121_v60  ;;  %v992_v0 = vmul.f32 %v991_v45, %v2917_v5 }
 0x142   : > { %v1003_v62 = vmul.f32 %v2996_v47, %v1002_v1  ;;  %v1014_v55 = vsub.f32 1.5, %v1013_v42  ;;  %v1114_v36 = vsel %vm1113_vm5, %v2524_v11, %v1112_v26  ;;  %v1025_v10 = vmul.f32 0.5, %v1024_v48 }
 0x143   : > { %v2046_v24 = vpop.eup %2045  ;;  %v1483_v12 = vadd.f32 %v1482_v43, %v1467_v21  ;;  %v1133_v54 = vmul.f32 0.5, %v1132_v59  ;;  %vm1007_vm8 = vcmp.eq.f32.partialorder %v2940_v16, 0.0  ;;  %v1008_v28 = vand.u32 2147483648, %v2940_v16 }
 0x144   : > { %v1435_v15 = vmul.f32 0.6931472, %v2046_v24  ;;  %v1116_v51 = vand.u32 2147483648, %v2524_v11  ;;  %v1144_v19 = vmul.f32 %v2824_v8, %v1143_v34  ;;  %v3495_v47 = vand.u32 2147483648, %v2884_v31 }
 0x145   : > { %v1484_v23 = vadd.f32 %v1483_v12, %v1468_v63  ;;  %v1123_v26 = vmul.f32 %v2733_v17, %v1122_v13  ;;  %v994_v2 = vsel %vm993_vm3, %v2917_v5, %v992_v0  ;;  %v1004_v32 = vmul.f32 %v1003_v62, %v2940_v16 }
 0x146   : > { %v1452_v53 = vsub.f32 %v1384_v35, %v1435_v15  ;;  %v3079_v61 = vpop.eup %2047  ;;  %v3085_v49 = vsel %vm983_vm2, %v3495_v47, %v982_v20  ;;  %v3094_v25 = vsel %vm1115_vm6, %v1116_v51, %v1114_v36  ;;  %v1155_v60 = vmul.f32 %v2871_v6, %v2773_v14 }
 0x147   : > { %v1015_v1 = vmul.f32 %v3016_v58, %v1014_v55  ;;  %v1026_v42 = vsub.f32 1.5, %v1025_v10  ;;  %v1134_v59 = vsub.f32 1.5, %v1133_v54  ;;  %vm1017_vm9 = vcmp.eq.f32.partialorder %v2950_v50, inf }
 0x148   : > { %v1469_v18 = vand.u32 2147483647, %v1452_v53  ;;  %v1020_v17 = vand.u32 2147483648, %v2950_v50  ;;  %v1035_v35 = vmul.f32 %v3079_v61, %v3024_v46  ;;  %v1145_v21 = vmul.f32 0.5, %v1144_v19 }
 0x149   : > { %v3107_v11 = vsel %vm995_vm4, %v996_v44, %v994_v2  ;;  %vm1019_vm10 = vcmp.eq.f32.partialorder %v2950_v50, 0.0  ;;  %v1124_v58 = vmul.f32 %v1123_v26, %v2637_v30  ;;  %vm1125_vm11 = vcmp.eq.f32.partialorder %v2637_v30, inf  ;;  %v3497_v2 = vld [vmem:[#allocation35_spill] sm:$0xff] }
 0x14a   : > { %v1485_v45 = vadd.f32 %v1484_v23, %v1469_v18  ;;  %vm1127_vm12 = vcmp.eq.f32.partialorder %v2637_v30, 0.0  ;;  %v1006_v48 = vsel %vm1005_vm7, %v2940_v16, %v1004_v32  ;;  %v1128_v24 = vand.u32 2147483648, %v2637_v30  ;;  %v3496_v18 = vld [vmem:[#allocation34_spill] sm:$0xff] }
 0x14b   : > { %v1156_v20 = vmul.f32 %v2871_v6, %v1155_v60  ;;  %v1167_v44 = vmul.f32 %v2904_v40, %v2828_v39  ;;  %v1016_v34 = vmul.f32 %v1015_v1, %v2950_v50  ;;  %v1027_v15 = vmul.f32 %v3029_v57, %v1026_v42 }
 0x14c   : > { %1486 = vadd.xlane.f32.xlu1 %v1485_v45  ;;  %vm1029_vm13 = vcmp.eq.f32.partialorder %v2991_v29, inf  ;;  %v1135_v63 = vmul.f32 %v2747_v41, %v1134_v59  ;;  %v1036_v43 = vmul.f32 %v3079_v61, %v1035_v35  ;;  %v1146_v13 = vsub.f32 1.5, %v1145_v21 }
 0x14d   : > { %v1179_v0 = vmul.f32 %v2936_v27, %v2873_v22  ;;  %2049 = vrsqrt.f32 %v2938_v52  ;;  %v3130_v62 = vsel %vm1007_vm8, %v1008_v28, %v1006_v48  ;;  %v1032_v55 = vand.u32 2147483648, %v2991_v29 }
 0x14e   : > { %v1126_v57 = vsel %vm1125_vm11, %v2637_v30, %v1124_v58  ;;  %vm1137_vm14 = vcmp.eq.f32.partialorder %v2685_v7, inf  ;;  %vm1031_vm15 = vcmp.eq.f32.partialorder %v2991_v29, 0.0  ;;  %v1157_v41 = vmul.f32 0.5, %v1156_v20 }
 0x14f   : > { %v1168_v36 = vmul.f32 %v2904_v40, %v1167_v44  ;;  %v1191_v53 = vmul.f32 %v2989_v56, %v2910_v33  ;;  %2051 = vrsqrt.f32 %v2948_v38  ;;  %v1018_v12 = vsel %vm1017_vm9, %v2950_v50, %v1016_v34 }
 0x150   : > { %v1028_v10 = vmul.f32 %v1027_v15, %v2991_v29  ;;  %v1136_v54 = vmul.f32 %v1135_v63, %v2685_v7  ;;  %vm1139_vm0 = vcmp.eq.f32.partialorder %v2685_v7, 0.0  ;;  %v1037_v28 = vmul.f32 0.5, %v1036_v43 }
 0x151   : > { %v1147_v51 = vmul.f32 %v2824_v8, %v1146_v13  ;;  %v1180_v19 = vmul.f32 %v2936_v27, %v1179_v0  ;;  %2053 = vrsqrt.f32 %v3496_v18  ;;  %v1044_v23 = vand.u32 2147483648, %v3024_v46 }
 0x152   : > { %v3154_v47 = vsel %vm1127_vm12, %v1128_v24, %v1126_v57  ;;  %v1140_v26 = vand.u32 2147483648, %v2685_v7  ;;  %2055 = vrsqrt.f32 %v3497_v2  ;;  %v3162_v60 = vsel %vm1019_vm10, %v1020_v17, %v1018_v12 }
 0x153   : > { %v3158_v32 = vpop.eup %2049  ;;  %v1158_v8 = vsub.f32 1.5, %v1157_v41  ;;  %v1169_v45 = vmul.f32 0.5, %v1168_v36  ;;  %v1192_v1 = vmul.f32 %v2989_v56, %v1191_v53  ;;  %v1138_v30 = vsel %vm1137_vm14, %v2685_v7, %v1136_v54  ;;  %v3498_v36 = vld [vmem:[#allocation28_spill] sm:$0xff] }
 0x154   : > { %vm1149_vm1 = vcmp.eq.f32.partialorder %v2716_v37, inf  ;;  %vm1151_vm2 = vcmp.eq.f32.partialorder %v2716_v37, 0.0  ;;  %v1203_v42 = vmul.f32 %v3158_v32, %v2938_v52  ;;  %v1030_v17 = vsel %vm1029_vm13, %v2991_v29, %v1028_v10  ;;  %v3499_v7 = vld [vmem:[#allocation20_spill] sm:$0xff] }
 0x155   : > { %v3172_v59 = vpop.eup %2051  ;;  %v1038_v35 = vsub.f32 1.5, %v1037_v28  ;;  %v1148_v21 = vmul.f32 %v1147_v51, %v2716_v37  ;;  %v1181_v58 = vmul.f32 0.5, %v1180_v19  ;;  %v1152_v48 = vand.u32 2147483648, %v2716_v37  ;;  %v3500_v51 = vld [vmem:[#allocation27_spill] sm:$0xff] }
 0x156   : > { %vm1161_vm3 = vcmp.eq.f32.partialorder %v2773_v14, inf  ;;  %v1164_v24 = vand.u32 2147483648, %v2773_v14  ;;  %v1215_v20 = vmul.f32 %v3172_v59, %v2948_v38  ;;  %v1141_v34 = vsel %vm1139_vm0, %v1140_v26, %v1138_v30  ;;  %v3501_v19 = vld [vmem:[#allocation19_spill] sm:$0xff] }
 0x157   : > { %v3183_v44 = vpop.eup %2053  ;;  %v1159_v15 = vmul.f32 %v2871_v6, %v1158_v8  ;;  %v1170_v63 = vsub.f32 1.5, %v1169_v45  ;;  %v1193_v43 = vmul.f32 0.5, %v1192_v1  ;;  %v3192_v0 = vsel %vm1031_vm15, %v1032_v55, %v1030_v17  ;;  %v3503_v8 = vld [vmem:[#allocation22_spill] sm:$0xff] }
 0x158   : > { %v3188_v13 = vpop.eup %2055  ;;  %vm1041_vm4 = vcmp.eq.f32.partialorder %v3024_v46, inf  ;;  %v1204_v57 = vmul.f32 %v3158_v32, %v1203_v42  ;;  %v1227_v41 = vmul.f32 %v3183_v44, %v3496_v18  ;;  %v1251_v53 = vsub.f32 %v3499_v7, %v3498_v36 }
 0x159   : > { %v1039_v6 = vmul.f32 %v3079_v61, %v1038_v35  ;;  %v1150_v12 = vsel %vm1149_vm1, %v2716_v37, %v1148_v21  ;;  %v1176_v10 = vand.u32 2147483648, %v2828_v39  ;;  %v1182_v55 = vsub.f32 1.5, %v1181_v58  ;;  %v3502_v61 = vld [vmem:[#allocation31_spill] sm:$0xff]  ;;  %v3504_v58 = vld [vmem:[#allocation32_spill] sm:$0xff] }
 0x15a   : > { %vm1163_vm5 = vcmp.eq.f32.partialorder %v2773_v14, 0.0  ;;  %vm1173_vm6 = vcmp.eq.f32.partialorder %v2828_v39, inf  ;;  %v1216_v54 = vmul.f32 %v3172_v59, %v1215_v20  ;;  %v1239_v28 = vmul.f32 %v3188_v13, %v3497_v2  ;;  %v3505_v20 = vld [vmem:[#allocation24_spill] sm:$0xff] }
 0x15b   : > { %v1250_v26 = vsub.f32 %v3501_v19, %v3500_v51  ;;  %v1252_v45 = vsub.f32 %v3503_v8, %v3502_v61  ;;  %v1160_v1 = vmul.f32 %v1159_v15, %v2773_v14  ;;  %v1171_v30 = vmul.f32 %v2904_v40, %v1170_v63  ;;  %v3506_v40 = vld [vmem:[#allocation25_spill] sm:$0xff] }
 0x15c   : > { %v1188_v42 = vand.u32 2147483648, %v2873_v22  ;;  %v1194_v17 = vsub.f32 1.5, %v1193_v43  ;;  %vm1185_vm7 = vcmp.eq.f32.partialorder %v2873_v22, inf  ;;  %v1205_v35 = vmul.f32 0.5, %v1204_v57 }
 0x15d   : > { %v1228_v21 = vmul.f32 %v3183_v44, %v1227_v41  ;;  %v1253_v36 = vsub.f32 %v3505_v20, %v3504_v58  ;;  %v1268_v7 = vmul.f32 %v1251_v53, %v1251_v53  ;;  %v1040_v51 = vmul.f32 %v1039_v6, %v3024_v46  ;;  %v3509_v58 = vld [vmem:[#allocation30_spill] sm:$0xff] }
 0x15e   : > { %v1153_v19 = vsel %vm1151_vm2, %v1152_v48, %v1150_v12  ;;  %v1183_v15 = vmul.f32 %v2936_v27, %v1182_v55  ;;  %v1254_v63 = vsub.f32 %v3506_v40, %v3054_v3  ;;  %vm1175_vm8 = vcmp.eq.f32.partialorder %v2828_v39, 0.0  ;;  %v3507_v27 = vld [vmem:[#allocation26_spill] sm:$0xff] }
 0x15f   : > { %v1217_v43 = vmul.f32 0.5, %v1216_v54  ;;  %v1240_v57 = vmul.f32 %v3188_v13, %v1239_v28  ;;  %v1267_v41 = vmul.f32 %v1250_v26, %v1250_v26  ;;  %v1269_v61 = vmul.f32 %v1252_v45, %v1252_v45 }
 0x160   : > { %v1162_v53 = vsel %vm1161_vm3, %v2773_v14, %v1160_v1  ;;  %v1172_v6 = vmul.f32 %v1171_v30, %v2828_v39  ;;  %v1195_v37 = vmul.f32 %v2989_v56, %v1194_v17  ;;  %v1255_v48 = vsub.f32 %v3507_v27, %v3094_v25  ;;  %v3508_v56 = vld [vmem:[#allocation29_spill] sm:$0xff] }
 0x161   : > { %vm1187_vm9 = vcmp.eq.f32.partialorder %v2873_v22, 0.0  ;;  %v1206_v3 = vsub.f32 1.5, %v1205_v35  ;;  %v1229_v12 = vmul.f32 0.5, %v1228_v21  ;;  %v1270_v55 = vmul.f32 %v1253_v36, %v1253_v36 }
 0x162   : > { %v1284_v54 = vadd.f32 %v1268_v7, %v1267_v41  ;;  %v3240_v28 = vsel %vm1041_vm4, %v3024_v46, %v1040_v51  ;;  %v1184_v26 = vmul.f32 %v1183_v15, %v2873_v22  ;;  %vm1197_vm10 = vcmp.eq.f32.partialorder %v2910_v33, inf }
 0x163   : > { %v1256_v8 = vsub.f32 %v3508_v56, %v3154_v47  ;;  %vm1199_vm11 = vcmp.eq.f32.partialorder %v2910_v33, 0.0  ;;  %v1218_v25 = vsub.f32 1.5, %v1217_v43  ;;  %v1241_v45 = vmul.f32 0.5, %v1240_v57 }
 0x164   : > { %v1271_v1 = vmul.f32 %v1254_v63, %v1254_v63  ;;  %v1285_v30 = vadd.f32 %v1284_v54, %v1269_v61  ;;  %v1165_v17 = vsel %vm1163_vm5, %v1164_v24, %v1162_v53  ;;  %v1174_v35 = vsel %vm1173_vm6, %v2828_v39, %v1172_v6  ;;  %v3510_v24 = vld [vmem:[#allocation33_spill] sm:$0xff]  ;;  %v3511_v61 = vld [vmem:[#allocation36_spill] sm:$0xff] }
 0x165   : > { %v1196_v21 = vmul.f32 %v1195_v37, %v2910_v33  ;;  %v1257_v20 = vsub.f32 %v3509_v58, %v1141_v34  ;;  %v1207_v36 = vmul.f32 %v3158_v32, %v1206_v3  ;;  %v1230_v47 = vsub.f32 1.5, %v1229_v12 }
 0x166   : > { %v1272_v7 = vmul.f32 %v1255_v48, %v1255_v48  ;;  %v1286_v51 = vadd.f32 %v1285_v30, %v1270_v55  ;;  %v1186_v15 = vsel %vm1185_vm7, %v2873_v22, %v1184_v26  ;;  %v1200_v14 = vand.u32 2147483648, %v2910_v33  ;;  %v3512_v48 = vld [vmem:[#allocation11_spill] sm:$0xff]  ;;  %v3515_v30 = vld [vmem:[#allocation14_spill] sm:$0xff] }
 0x167   : > { %vm1209_vm12 = vcmp.eq.f32.partialorder %v2938_v52, inf  ;;  %v1258_v40 = vsub.f32 %v3510_v24, %v1153_v19  ;;  %vm1211_vm13 = vcmp.eq.f32.partialorder %v2938_v52, 0.0  ;;  %v1219_v63 = vmul.f32 %v3172_v59, %v1218_v25  ;;  %v3513_v59 = vld [vmem:[#allocation12_spill] sm:$0xff] }
 0x168   : > { %v1242_v34 = vsub.f32 1.5, %v1241_v45  ;;  %v1273_v43 = vmul.f32 %v1256_v8, %v1256_v8  ;;  %v1287_v32 = vadd.f32 %v1286_v51, %v1271_v1  ;;  %v1177_v57 = vsel %vm1175_vm8, %v1176_v10, %v1174_v35 }
 0x169   : > { %v1198_v41 = vsel %vm1197_vm10, %v2910_v33, %v1196_v21  ;;  %v1259_v53 = vsub.f32 %v3511_v61, %v1165_v17  ;;  %v1274_v6 = vmul.f32 %v1257_v20, %v1257_v20  ;;  %v1208_v37 = vmul.f32 %v1207_v36, %v2938_v52  ;;  %v3516_v20 = vld [vmem:[#allocation15_spill] sm:$0xff] }
 0x16a   : > { %v1231_v19 = vmul.f32 %v3183_v44, %v1230_v47  ;;  %v1288_v27 = vadd.f32 %v1287_v32, %v1272_v7  ;;  %v1309_v3 = vadd.f32 %v3513_v59, %v3512_v48  ;;  %v1189_v12 = vsel %vm1187_vm9, %v1188_v42, %v1186_v15  ;;  %v3514_v44 = vld [vmem:[#allocation13_spill] sm:$0xff] }
 0x16b   : > { %v1212_v39 = vand.u32 2147483648, %v2938_v52  ;;  %v1260_v10 = vsub.f32 %v3048_v4, %v1177_v57  ;;  %v1275_v55 = vmul.f32 %v1258_v40, %v1258_v40  ;;  %vm1043_vm14 = vcmp.eq.f32.partialorder %v3024_v46, 0.0  ;;  %v3518_v57 = vld [vmem:[#allocation17_spill] sm:$0xff] }
 0x16c   : > { %v1220_v54 = vmul.f32 %v1219_v63, %v2948_v38  ;;  %v1243_v26 = vmul.f32 %v3188_v13, %v1242_v34  ;;  %v1289_v56 = vadd.f32 %v1288_v27, %v1273_v43  ;;  %v1310_v8 = vadd.f32 %v1309_v3, %v3514_v44  ;;  %v3520_v3 = vld [vmem:[#allocation21_spill] sm:$0xff] }
 0x16d   : > { %v1201_v25 = vsel %vm1199_vm11, %v1200_v14, %v1198_v41  ;;  %vm1221_vm15 = vcmp.eq.f32.partialorder %v2948_v38, inf  ;;  %v1261_v22 = vsub.f32 %v3085_v49, %v1189_v12  ;;  %v1276_v42 = vmul.f32 %v1259_v53, %v1259_v53  ;;  %v3517_v14 = vld [vmem:[#allocation16_spill] sm:$0xff] }
 0x16e   : > { %v1210_v4 = vsel %vm1209_vm12, %v2938_v52, %v1208_v37  ;;  %v1232_v45 = vmul.f32 %v1231_v19, %v3496_v18  ;;  %v1290_v1 = vadd.f32 %v1289_v56, %v1274_v6  ;;  %v1311_v13 = vadd.f32 %v1310_v8, %v3515_v30  ;;  %v3519_v37 = vld [vmem:[#allocation18_spill] sm:$0xff] }
 0x16f   : > { %vm1223_vm0 = vcmp.eq.f32.partialorder %v2948_v38, 0.0  ;;  %v1224_v17 = vand.u32 2147483648, %v2948_v38  ;;  %v1262_v33 = vsub.f32 %v3107_v11, %v1201_v25  ;;  %v1277_v35 = vmul.f32 %v1260_v10, %v1260_v10 }
 0x170   : > { %v1222_v21 = vsel %vm1221_vm15, %v2948_v38, %v1220_v54  ;;  %v1244_v49 = vmul.f32 %v1243_v26, %v3497_v2  ;;  %v1291_v58 = vadd.f32 %v1290_v1, %v1275_v55  ;;  %v1312_v36 = vadd.f32 %v1311_v13, %v3516_v20 }
 0x171   : > { %v1213_v47 = vsel %vm1211_vm13, %v1212_v39, %v1210_v4  ;;  %vm1233_vm1 = vcmp.eq.f32.partialorder %v3496_v18, inf  ;;  %vm1235_vm2 = vcmp.eq.f32.partialorder %v3496_v18, 0.0  ;;  %v1278_v7 = vmul.f32 %v1261_v22, %v1261_v22 }
 0x172   : > { %v1234_v51 = vsel %vm1233_vm1, %v3496_v18, %v1232_v45  ;;  %v1263_v11 = vsub.f32 %v3130_v62, %v1213_v47  ;;  %v1292_v15 = vadd.f32 %v1291_v58, %v1276_v42  ;;  %v1313_v24 = vadd.f32 %v1312_v36, %v3517_v14 }
 0x173   : > { %v1225_v40 = vsel %vm1223_vm0, %v1224_v17, %v1222_v21  ;;  %v1236_v63 = vand.u32 2147483648, %v3496_v18  ;;  %vm1245_vm3 = vcmp.eq.f32.partialorder %v3497_v2, inf  ;;  %v1279_v52 = vmul.f32 %v1262_v33, %v1262_v33 }
 0x174   : > { %v1246_v34 = vsel %vm1245_vm3, %v3497_v2, %v1244_v49  ;;  %v1264_v43 = vsub.f32 %v3162_v60, %v1225_v40  ;;  %v1293_v32 = vadd.f32 %v1292_v15, %v1277_v35  ;;  %v1314_v41 = vadd.f32 %v1313_v24, %v3518_v57 }
 0x175   : > { %v1045_v62 = vsel %vm1043_vm14, %v1044_v23, %v3240_v28  ;;  %v1237_v38 = vsel %vm1235_vm2, %v1236_v63, %v1234_v51  ;;  %vm1247_vm4 = vcmp.eq.f32.partialorder %v3497_v2, 0.0  ;;  %v1248_v18 = vand.u32 2147483648, %v3497_v2  ;;  %v3521_v28 = vld [vmem:[#allocation23_spill] sm:$0xff] }
 0x176   : > { %v1265_v61 = vsub.f32 %v3192_v0, %v1237_v38  ;;  %v1280_v53 = vmul.f32 %v1263_v11, %v1263_v11  ;;  %v1294_v6 = vadd.f32 %v1293_v32, %v1278_v7  ;;  %v1315_v60 = vadd.f32 %v1314_v41, %v3519_v37 }
 0x177   : > { %v1249_v19 = vsel %vm1247_vm4, %v1248_v18, %v1246_v34  ;;  %v1281_v48 = vmul.f32 %v1264_v43, %v1264_v43 }
 0x178   : > { %v1266_v27 = vsub.f32 %v1045_v62, %v1249_v19  ;;  %v1295_v59 = vadd.f32 %v1294_v6, %v1279_v52  ;;  %v1316_v12 = vadd.f32 %v1315_v60, %v3520_v3  ;;  %v1282_v39 = vmul.f32 %v1265_v61, %v1265_v61 }
 0x17a   : > { %v1296_v23 = vadd.f32 %v1295_v59, %v1280_v53  ;;  %v1317_v10 = vadd.f32 %v1316_v12, %v3521_v28  ;;  %v1283_v55 = vmul.f32 %v1266_v27, %v1266_v27 }
 0x17c   : > { %v1297_v54 = vadd.f32 %v1296_v23, %v1281_v48  ;;  %v1318_v2 = vadd.f32 %v1317_v10, %v2830_v9 }
 0x17e   : > { %v1298_v0 = vadd.f32 %v1297_v54, %v1282_v39  ;;  %v1319_v26 = vadd.f32 %v1318_v2, %v2884_v31 }
 0x180   : > { %v1299_v56 = vadd.f32 %v1298_v0, %v1283_v55  ;;  %v1320_v44 = vadd.f32 %v1319_v26, %v2917_v5 }
 0x182   : > { %1300 = vadd.xlane.f32.xlu0 %v1299_v56  ;;  %v1321_v8 = vadd.f32 %v1320_v44, %v2940_v16 }
 0x184   : > { %v1322_v25 = vadd.f32 %v1321_v8, %v2950_v50 }
 0x186   : > { %v1323_v22 = vadd.f32 %v1322_v25, %v2991_v29 }
 0x188   : > { %v1324_v42 = vadd.f32 %v1323_v22, %v3024_v46 }
 0x18a   : > { %1325 = vadd.xlane.f32.xlu0 %v1324_v42 }
 0x1bf   : > { %v1487_v9 = vpop.xlane.xlu1 %1486 }
 0x1c0   : > { %v1488_v31 = vrot.slane %v1487_v9, 4 }
 0x1c2   : > { %v1489_v1 = vadd.f32 %v1488_v31, %v1487_v9 }
 0x1c4   : > { %v1490_v13 = vrot.slane %v1489_v1, 2 }
 0x1c6   : > { %v1491_v35 = vadd.f32 %v1490_v13, %v1489_v1 }
 0x1c8   : > { %v1492_v58 = vrot.slane %v1491_v35, 1 }
 0x1ca   : > { %v1493_v47 = vadd.f32 %v1492_v58, %v1491_v35 }
 0x1f5   : > { %v1301_v4 = vpop.xlane.xlu0 %1300 }
 0x1f6   : > { %v1302_v45 = vrot.slane %v1301_v4, 4 }
 0x1f8   : > { %v1303_v5 = vadd.f32 %v1302_v45, %v1301_v4 }
 0x1fa   : > { %v1304_v30 = vrot.slane %v1303_v5, 2 }
 0x1fc   : > { %v1305_v16 = vadd.f32 %v1304_v30, %v1303_v5 }
 0x1fd   : > { %v1326_v50 = vpop.xlane.xlu0 %1325 }
 0x1fe   : > { %v1327_v17 = vrot.slane %v1326_v50, 4  ;;  %v1306_v29 = vrot.slane %v1305_v16, 1 }
 0x200   : > { %v1328_v33 = vadd.f32 %v1327_v17, %v1326_v50  ;;  %v1307_v46 = vadd.f32 %v1306_v29, %v1305_v16 }
 0x202   : > { %v1329_v21 = vrot.slane %v1328_v33, 2  ;;  %1828 = vpush %v1307_v46 }
 0x204   : > { %v1330_v49 = vadd.f32 %v1329_v21, %v1328_v33 }
 0x206   : > { %v1331_v20 = vrot.slane %v1330_v49, 1 }
 0x208   : > { %v1332_v36 = vadd.f32 %v1331_v20, %v1330_v49 }
 0x20a   : > { %1830 = vpush %v1332_v36 }
 0x20b   : > { %1832 = vpush %v1493_v47 }
 0x233   : > { %s1829_s27 = spop %1828 }
 0x234   : > { %s1497_s26 = sadd.f32 %s1829_s27, %s1496_s15 }
 0x236   : > { %1499 = sst [smem:[#allocation2]] %s1497_s26 }
 0x237   : > { %s1512_s1 = sld [smem:[#allocation2]] (!%p1816_p1) }
 0x23b   : > { %s1831_s16 = spop %1830 }
 0x23c   : > { %s1501_s8 = sadd.f32 %s1831_s16, %s1814_s7  ;;  %s1833_s10 = spop %1832 }
 0x23d   : > { %s1495_s14 = smul.f32 0.5, %s1833_s10 }
 0x23e   : > { %1503 = sst [smem:[#allocation2 + $0x1]] %s1501_s8  ;;  %1511 = sbr.rel (%p1816_p1) target bundleno = 586 (0x24a), region = 40 }
 0x23f   : > { %s1505_s13 = sadd.f32 %s1815_s11, %s1495_s14 }
 0x240   : > { %s1817_s2 = sld [smem:[#allocation2 + $0x1]] (!%p1816_p1) }
 0x241   : > { %1507 = sst [smem:[#allocation2 + $0x2]] %s1505_s13 }
 0x242   : > { %s1818_s15 = sld [smem:[#allocation2 + $0x2]] (!%p1816_p1) }
 0x243   : > { %v1513_v7 = vstv %s1512_s1 }
 0x244   : > { %1515 = vst [vmem:[%s270_s12] sm:$0xff] %v1513_v7 }
 0x246   : > { %v1517_v51 = vstv %s1817_s2 }
 0x247   : > { %1519 = vst [vmem:[%s277_s29] sm:$0xff] %v1517_v51 }
 0x248   : > { %v1521_v11 = vstv %s1818_s15 }
 0x249   : > { %1523 = vst [vmem:[%s3451_s0] sm:$0xff] %v1521_v11 }
 0x24a PF: > { %s3522_s27 = sadd.s32 4294967295, %s2211_s25   ;;  %s3342_s7 = sshll.u32 %s2199_s22, 3 }
 0x24b   : > { %s3339_s21 = sand.u32 1, %s3522_s27   ;;  %s1559_s11 = scalar_lea.hbm %s3431_s4, %s3342_s7 }
 0x24c   : > { %s1561_s2 = sshll.u32 %s277_s29, 4  ;;  %s1563_s16 = sshll.u32 %s1559_s11, 4  ;;  %s1562_s2 = int_to_ptr.vmem [resolvable:$true] %s1561_s2  ;;  %s1564_s16 = int_to_ptr.hbm [resolvable:$true] %s1563_s16 }
 0x24d   : > { %s1530_s8 = scalar_lea.sflag [#allocation6], %s3339_s21  ;;  %s2071_s10 = sshra.s32 %s1564_s16, 4  ;;  %s2072_s10 = int_to_ptr.hbm [resolvable:$true] %s2071_s10 }
 0x24e   : > { %s2073_s14 = scalar_lea.hbm %s2072_s10, 8  ;;  %s2077_s15 = scalar_lea.hbm %s3431_s4, 32 }
 0x24f   : > { %p2074_p2 = scmp.ne.s32.totalorder %s2072_s10, %s2073_s14  ;;  %p2078_p6 = scmp.lt.s32.totalorder %s2072_s10, %s3431_s4 }
 0x250   : > { %p2079_p7 = scmp.lt.s32.totalorder %s2077_s15, %s2073_s14 }
 0x251   : > { %p2075_p4 = pnand %p2074_p2, %p2295_p3 }
 0x252   : > { %p2080_p8 = por %p2079_p7, %p2078_p6 }
 0x253   : > { %p2076_p5 = pneg %p2075_p4 }
 0x255   : > { %p2081_p10 = pnand %p2080_p8, %p2076_p5 }
 0x257   : > { %2084 = shalt.err (!%p2081_p10)
}
 0x258   : > { %1839 = dma.vmem_to_hbm [thread:$0]  (%p2295_p3), %s1562_s2, 128, %s1564_s16, %s1530_s8  }
 0x259   : > { %s1545_s1 = scalar_lea.hbm %s3430_s3, %s3342_s7  ;;  %s1547_s0 = sshll.u32 %s270_s12, 4  ;;  %s1548_s0 = int_to_ptr.vmem [resolvable:$true] %s1547_s0 }
 0x25a   : > { %s1549_s11 = sshll.u32 %s1545_s1, 4  ;;  %s3523_s10 = sand.u32 1, %s2187_s19   ;;  %s1550_s11 = int_to_ptr.hbm [resolvable:$true] %s1549_s11 }
 0x25b   : > { %s1525_s14 = scalar_lea.sflag [#allocation4], %s3523_s10  ;;  %s2099_s13 = sshra.s32 %s1550_s11, 4  ;;  %s2100_s13 = int_to_ptr.hbm [resolvable:$true] %s2099_s13 }
 0x25c   : > { %s2101_s22 = scalar_lea.hbm %s2100_s13, 8  ;;  %s2105_s16 = scalar_lea.hbm %s3430_s3, 32 }
 0x25d   : > { %p2102_p11 = scmp.ne.s32.totalorder %s2100_s13, %s2101_s22  ;;  %p2106_p0 = scmp.lt.s32.totalorder %s2100_s13, %s3430_s3 }
 0x25e   : > { %p2107_p1 = scmp.lt.s32.totalorder %s2105_s16, %s2101_s22 }
 0x25f   : > { %p2103_p12 = pnand %p2102_p11, %p2295_p3 }
 0x260   : > { %p2108_p2 = por %p2107_p1, %p2106_p0 }
 0x261   : > { %p2104_p13 = pneg %p2103_p12 }
 0x263   : > { %p2109_p4 = pnand %p2108_p2, %p2104_p13 }
 0x265   : > { %2112 = shalt.err (!%p2109_p4)
}
 0x266   : > { %1838 = dma.vmem_to_hbm [thread:$0]  (%p2295_p3), %s1548_s0, 128, %s1550_s11, %s1525_s14  }
 0x267   : > { %s1573_s1 = scalar_lea.hbm %s3432_s5, %s3342_s7  ;;  %s3524_s10 = scalar_lea.vmem [#allocation7], %s2329_s17 }
 0x268   : > { %s1575_s15 = sshll.u32 %s3524_s10, 4  ;;  %s1577_s2 = sshll.u32 %s1573_s1, 4  ;;  %s1576_s15 = int_to_ptr.vmem [resolvable:$true] %s1575_s15  ;;  %s1578_s2 = int_to_ptr.hbm [resolvable:$true] %s1577_s2 }
 0x269   : > { %s2127_s13 = sshra.s32 %s1578_s2, 4  ;;  %s2133_s0 = scalar_lea.hbm %s3432_s5, 32  ;;  %s2128_s13 = int_to_ptr.hbm [resolvable:$true] %s2127_s13 }
 0x26a   : > { %s2129_s22 = scalar_lea.hbm %s2128_s13, 8  ;;  %p2134_p8 = scmp.lt.s32.totalorder %s2128_s13, %s3432_s5 }
 0x26b   : > { %p2130_p5 = scmp.ne.s32.totalorder %s2128_s13, %s2129_s22  ;;  %p2135_p10 = scmp.lt.s32.totalorder %s2133_s0, %s2129_s22 }
 0x26d   : > { %p2131_p6 = pnand %p2130_p5, %p2295_p3  ;;  %p2136_p11 = por %p2135_p10, %p2134_p8 }
 0x26f   : > { %p2132_p7 = pneg %p2131_p6 }
 0x271   : > { %p2137_p12 = pnand %p2136_p11, %p2132_p7 }
 0x273   : > { %2140 = shalt.err (!%p2137_p12)
}
 0x274   : > { %1840 = dma.vmem_to_hbm [thread:$0]  (%p2295_p3), %s1576_s15, 128, %s1578_s2, %s1530_s8  }
 0x275 PF: > { %p1855_p13 = scmp.ge.s32.totalorder %s2211_s25, 2  ;;  %s1589_s17 = sand.u32 1, %s2183_s18  }
 0x276   : > { %s1590_s7 = scalar_lea.sflag [#allocation4], %s1589_s17 }
 0x277   : > { %p1845_p0 = pnand %p1855_p13, %p2307_p9 }
 0x279   : > { %p1846_p1 = pneg %p1845_p0 }
 0x27b   : > { %2174 = dma.done.wait (%p1846_p1), %s1590_s7, 128  }
 0x27c   : > { %2176 = vsyncadd (%p1846_p1), %s1590_s7, 4294967168  ;;  %s3525_s29 = sadd.s32 4294967294, %s2211_s25  }
 0x27d   : > { %s1599_s12 = sand.u32 1, %s3525_s29  }
 0x27e   : > { %s1600_s26 = scalar_lea.sflag [#allocation6], %s1599_s12 }
 0x27f   : > { %2178 = dma.done.wait (%p1846_p1), %s1600_s26, 256  }
 0x280   : > { %2180 = vsyncadd (%p1846_p1), %s1600_s26, 4294967040  ;;  %s22_s25 = sadd.s32 1, %s2211_s25   ;;  %s3526_s30 = sld [smem:[#allocation10_spill]] }
 0x281   : > { %p19_p3 = scmp.ge.s32.totalorder %s22_s25, 10   ;;  %s3527_s18 = smov %s2187_s19 }
 0x282   : > { %s3528_s19 = smov %s2191_s20  ;;  %s3529_s20 = smov %s2315_s9 }
 0x283   : > { %s3530_s21 = smov %s2203_s23  ;;  %s3531_s22 = smov %s2207_s24 }
 0x284   : > { %s3532_s23 = smov %s3535_s28  ;;  %21 = sbr.rel (!%p19_p3) target bundleno = 11 (0xb), region = 116 }
 0x286   : > { %s3533_s24 = smov %s3526_s30 }
 0x289   :  { %1616 = vsyncpa [#allocation4], 1 }
 0x28a   :  { %1618 = vsyncpa [#allocation4 + $0x1], 1 }
 0x28b   :  { %1619 = vsyncpa [#allocation6], 1 }
 0x28c   :  { %1621 = vsyncpa [#allocation6 + $0x1], 1 }

</bundles_post_ra>
